<compile_context>
chip_gen: v7x
topology: tpu7x:2x2x1
jax: 0.10.0
libtpu: 0.0.40
codegen_flags: <defaults>
</compile_context>

<pallas_src>
import functools

import jax
import jax.numpy as jnp
from jax import lax
from jax.experimental import pallas as pl
from jax.experimental.pallas import tpu as pltpu

NEG_SLOPE = 0.01  # PyTorch nn.LeakyReLU default negative_slope


def _leaky(x):
    return jnp.where(x >= 0, x, NEG_SLOPE * x)


def _lane_shift(x2d, s, M):
    """y[:, p] = x2d[:, (p + s) % M] — circular shift along the lane axis.

    Lowers to an XLU lane rotation (vrot) which co-issues with the VPU select
    work of the reflection fixups.  np.roll semantics: roll(x, k)[p] = x[p-k],
    so a left-shift by s is a roll by (M - s) % M."""
    s = s % M
    if s == 0:
        return x2d
    return pltpu.roll(x2d, shift=(M - s) % M, axis=1)


def _edge_masks(H, W):
    """(1, H*W) boolean lane masks for the reflection-padding edge fixups."""
    M = H * W
    p = lax.broadcasted_iota(jnp.int32, (1, M), 1)   # flat pixel index per lane
    col = p % W
    return (col == 0, col == W - 1, p < W, p >= (H - 1) * W)


def _write_reflect_taps(patches_ref, x2d, lane_off, H, W, masks):
    """Write the nine 3x3 reflect-padded taps of one image (x2d: (C, H*W))
    into patches_ref[:, lane_off : lane_off + H*W].

    Tap t = (oy+1)*3 + (ox+1) goes to rows [t*C, (t+1)*C): tap-major /
    c_in-minor, matching the (C_out, 9*C_in) im2col weight layout.

    Structure is ox-outer so at most ~6 (C, H*W) values are live at once
    (3 row-shifted copies + 3 column-fixed taps); every finished tap is stored
    straight to the VMEM scratch, so nothing piles up in vregs and no
    (H+2, W+2) padded buffer is ever materialized."""
    C, M = x2d.shape
    first_col, last_col, first_row, last_row = masks

    # Row-shifted copies, shared by every ox.  Index 0/1/2 <-> oy = -1/0/+1.
    row_sh = [_lane_shift(x2d, oy * W, M) for oy in (-1, 0, 1)]

    for ox_idx, ox in enumerate((-1, 0, 1)):
        # Column-reflection-fixed taps for this ox, one per oy.
        cf = []
        for rs in row_sh:
            if ox == 0:
                cf.append(rs)
            else:
                fwd = _lane_shift(rs, ox, M)      # rolled(oy, ox)
                rev = _lane_shift(rs, -ox, M)     # reflected source at the edge
                mask = first_col if ox == -1 else last_col
                cf.append(jnp.where(mask, rev, fwd))
        # Row-reflection fixups, then store each tap immediately.
        taps = (jnp.where(first_row, cf[2], cf[0]),   # oy = -1
                cf[1],                                # oy =  0
                jnp.where(last_row, cf[0], cf[2]))    # oy = +1
        for oy_idx, tap in enumerate(taps):
            t = oy_idx * 3 + ox_idx
            patches_ref[t * C:(t + 1) * C, lane_off:lane_off + M] = tap


def _resblock_kernel(x_ref, w1_ref, b1_ref, w2_ref, b2_ref,
                     sw1_ref, sb1_ref, sw2_ref, sb2_ref, o_ref,
                     patches_ref, h_ref, y_ref,
                     *, H, W, block_n):
    C = x_ref.shape[1]
    M = H * W
    inv_m = 1.0 / M
    mm_dtype = patches_ref.dtype

    # Hoisted once per grid step (shared by both convs and all images).
    masks = _edge_masks(H, W)
    w1 = w1_ref[...]; b1 = b1_ref[...]
    w2 = w2_ref[...]; b2 = b2_ref[...]

    # ---- conv1: per-image im2col taps straight into the VMEM scratch, then
    #      ONE batched matmul over all block_n images (K = 9*C, N = block_n*M).
    for n in range(block_n):                       # block_n <= 8; stores bound live ranges
        _write_reflect_taps(patches_ref, x_ref[n].astype(mm_dtype), n * M, H, W, masks)
    h = jnp.dot(w1, patches_ref[...], preferred_element_type=jnp.float32) + b1
    h_ref[...] = _leaky(h).astype(mm_dtype)        # conv2 taps built in mm_dtype

    # ---- conv2: same, taps built from the conv1 activations in VMEM.
    for n in range(block_n):
        _write_reflect_taps(patches_ref, h_ref[:, n * M:(n + 1) * M], n * M, H, W, masks)
    y_ref[...] = jnp.dot(w2, patches_ref[...], preferred_element_type=jnp.float32) + b2

    # ---- SELayer, batched over the whole block:
    #      global avg pool -> (Cr,C)@(C,block_n) -> LeakyReLU -> (C,Cr)@(Cr,block_n) -> sigmoid
    m_cols = [jnp.sum(y_ref[:, n * M:(n + 1) * M], axis=1, keepdims=True)
              for n in range(block_n)]
    m = (m_cols[0] if block_n == 1 else jnp.concatenate(m_cols, axis=1)) * inv_m  # (C, bn)
    s = jnp.dot(sw1_ref[...], m, preferred_element_type=jnp.float32) + sb1_ref[...]
    s = jnp.dot(sw2_ref[...], _leaky(s), preferred_element_type=jnp.float32) + sb2_ref[...]
    s = jax.nn.sigmoid(s)                                                         # (C, bn)

    # ---- channel scale + residual add; one lane-dense store per image.
    for n in range(block_n):
        o_ref[n] = (y_ref[:, n * M:(n + 1) * M] * s[:, n:n + 1]
                    + x_ref[n]).astype(o_ref.dtype)


def _pick_block_n(N, max_block=8):
    """Images per grid step.  Prefer >= 4 grid steps (>= 2 per v7x TensorCore
    so the software pipeline overlaps DMA with compute) with the largest block
    that still allows it; fall back to >= 2 steps, then to one big block."""
    divisors = [d for d in range(1, min(N, max_block) + 1) if N % d == 0]
    for min_steps in (4, 2, 1):
        ok = [d for d in divisors if N // d >= min_steps]
        if ok:
            return max(ok)
    return N


def resblock_pallas(x_nchw, params, *, block_n=None, interpret=False):
    """x_nchw: (N, C, H, W).  params from prepare_params().  Returns (N, C, H, W)."""
    w1t, b1, w2t, b2, sw1, sb1, sw2, sb2 = params
    N, C, H, W = x_nchw.shape
    M = H * W
    Cr = sw1.shape[0]
    mm_dtype = w1t.dtype
    assert H >= 2 and W >= 2, "ReflectionPad2d(1) needs H, W >= 2"
    # TODO(synk): for H*W not a multiple of 128, pad the flattened lane axis in
    # this wrapper (and mask the residual add) to keep loads/stores lane-dense.
    if block_n is None:
        block_n = _pick_block_n(N)
    assert N % block_n == 0
    grid = (N // block_n,)

    # Free relabel of the NCHW bytes: no NCHW<->NHWC transpose round trips.
    x_flat = x_nchw.reshape(N, C, M)

    def full(shape):
        return pl.BlockSpec(shape, lambda i, _nd=len(shape): (0,) * _nd)

    kernel = functools.partial(_resblock_kernel, H=H, W=W, block_n=block_n)

    out_flat = pl.pallas_call(
        kernel,
        out_shape=jax.ShapeDtypeStruct((N, C, M), x_nchw.dtype),
        grid_spec=pltpu.PrefetchScalarGridSpec(
            num_scalar_prefetch=0,
            grid=grid,
            in_specs=[
                pl.BlockSpec((block_n, C, M), lambda i: (i, 0, 0)),  # x (lane-dense)
                full((C, 9 * C)),   # conv1 weight, im2col layout
                full((C, 1)),       # conv1 bias
                full((C, 9 * C)),   # conv2 weight
                full((C, 1)),       # conv2 bias
                full((Cr, C)),      # SE squeeze 1x1
                full((Cr, 1)),      # SE squeeze bias
                full((C, Cr)),      # SE excite 1x1
                full((C, 1)),       # SE excite bias
            ],
            out_specs=pl.BlockSpec((block_n, C, M), lambda i: (i, 0, 0)),
            scratch_shapes=[
                pltpu.VMEM((9 * C, block_n * M), mm_dtype),   # im2col patches
                pltpu.VMEM((C, block_n * M), mm_dtype),       # conv1 activations
                pltpu.VMEM((C, block_n * M), jnp.float32),    # conv2 output (pre-SE)
            ],
        ),
        # Working set is a few MiB -> the default scoped-VMEM limit is plenty.
        # (Do NOT request 64 MiB: that is the entire per-TC VMEM on v7x.)
        compiler_params=pltpu.CompilerParams(
            dimension_semantics=("parallel",),
        ),
        interpret=interpret,
    )(x_flat, w1t, b1, w2t, b2, sw1, sb1, sw2, sb2)

    return out_flat.reshape(N, C, H, W)


def prepare_params(w1_oihw, b1, w2_oihw, b2, sw1, sb1, sw2, sb2,
                   matmul_dtype=jnp.bfloat16):
    """Re-layout PyTorch-style parameters for the kernel.

    Conv weights OIHW (C, C, 3, 3) -> (C_out, 9*C_in), tap-major / c_in-minor
    (matches the im2col patch order).  Biases become (C, 1) columns.  Conv
    matmul operands (and the tap construction) run in matmul_dtype; pass
    jnp.float32 for exact numerics / v5e-style f32 elementwise."""
    C = w1_oihw.shape[0]
    Cr = sw1.shape[0]

    def conv_w(w):
        return jnp.transpose(w, (0, 2, 3, 1)).reshape(C, 9 * C).astype(matmul_dtype)

    return (conv_w(w1_oihw), b1.reshape(C, 1).astype(jnp.float32),
            conv_w(w2_oihw), b2.reshape(C, 1).astype(jnp.float32),
            sw1.astype(jnp.float32), sb1.reshape(Cr, 1).astype(jnp.float32),
            sw2.astype(jnp.float32), sb2.reshape(C, 1).astype(jnp.float32))


# ----------------------- pure-JAX reference (for checking) -----------------------
def resblock_ref(x, oihw_params):
    w1, b1, w2, b2, sw1, sb1, sw2, sb2 = oihw_params  # conv weights in OIHW

    def refl_pad(a):
        return jnp.pad(a, ((0, 0), (0, 0), (1, 1), (1, 1)), mode="reflect")

    def conv(a, w, b):
        y = lax.conv_general_dilated(
            refl_pad(a), w, (1, 1), "VALID",
            dimension_numbers=("NCHW", "OIHW", "NCHW"))
        return y + b[None, :, None, None]

    h = conv(x, w1, b1)
    h = jnp.where(h >= 0, h, NEG_SLOPE * h)
    h = conv(h, w2, b2)
    m = jnp.mean(h, axis=(2, 3), keepdims=True)                       # (N,C,1,1)
    s = jnp.einsum("nchw,oc->nohw", m, sw1) + sb1[None, :, None, None]
    s = jnp.where(s >= 0, s, NEG_SLOPE * s)
    s = jnp.einsum("nchw,oc->nohw", s, sw2) + sb2[None, :, None, None]
    s = jax.nn.sigmoid(s)
    return h * s + x


if __name__ == "__main__":
    key = jax.random.PRNGKey(0)
    N, C, H, W = 2, 32, 16, 16          # num_filter=32 so num_filter//16 = 2
    Cr = C // 16

    ks = jax.random.split(key, 9)
    x = jax.random.normal(ks[0], (N, C, H, W), jnp.float32)

    # PyTorch-native parameter shapes (OIHW conv weights, 1x1 SE convs as (O, I)).
    w1 = jax.random.normal(ks[1], (C, C, 3, 3), jnp.float32) * 0.05
    b1 = jax.random.normal(ks[2], (C,), jnp.float32) * 0.05
    w2 = jax.random.normal(ks[3], (C, C, 3, 3), jnp.float32) * 0.05
    b2 = jax.random.normal(ks[4], (C,), jnp.float32) * 0.05
    sw1 = jax.random.normal(ks[5], (Cr, C), jnp.float32) * 0.1
    sb1 = jax.random.normal(ks[6], (Cr,), jnp.float32) * 0.1
    sw2 = jax.random.normal(ks[7], (C, Cr), jnp.float32) * 0.1
    sb2 = jax.random.normal(ks[8], (C,), jnp.float32) * 0.1

    raw = (w1, b1, w2, b2, sw1, sb1, sw2, sb2)
    ref = resblock_ref(x, raw)
    fwd = jax.jit(resblock_pallas)

    # 1) exactness check: f32 taps + f32 MXU operands, tight tolerance.
    p32 = prepare_params(*raw, matmul_dtype=jnp.float32)
    out32 = jax.block_until_ready(fwd(x, p32))
    assert out32.shape == (N, C, H, W)
    err32 = float(jnp.max(jnp.abs(out32 - ref)))
    assert jnp.allclose(out32, ref, rtol=1e-4, atol=1e-4), err32

    # 2) fast path: bf16 taps + bf16 MXU operands (f32 accumulation); bf16 tolerance.
    p16 = prepare_params(*raw, matmul_dtype=jnp.bfloat16)
    out16 = jax.block_until_ready(fwd(x, p16))
    err16 = float(jnp.max(jnp.abs(out16 - ref)))
    assert jnp.allclose(out16, ref, rtol=5e-2, atol=5e-2), err16

    print("KERNEL_OK")
</pallas_src>

<mosaic_0001>
module attributes {stable_mosaic.version = 11 : i64} {
  func.func @_resblock_kernel(%arg0: i32, %arg1: memref<1x32x256xf32, #tpu.memory_space<vmem>>, %arg2: memref<32x288xf32, #tpu.memory_space<vmem>>, %arg3: memref<32x1xf32, #tpu.memory_space<vmem>>, %arg4: memref<32x288xf32, #tpu.memory_space<vmem>>, %arg5: memref<32x1xf32, #tpu.memory_space<vmem>>, %arg6: memref<2x32xf32, #tpu.memory_space<vmem>>, %arg7: memref<2x1xf32, #tpu.memory_space<vmem>>, %arg8: memref<32x2xf32, #tpu.memory_space<vmem>>, %arg9: memref<32x1xf32, #tpu.memory_space<vmem>>, %arg10: memref<1x32x256xf32, #tpu.memory_space<vmem>>, %arg11: memref<288x256xf32, #tpu.memory_space<vmem>>, %arg12: memref<32x256xf32, #tpu.memory_space<vmem>>, %arg13: memref<32x256xf32, #tpu.memory_space<vmem>>) attributes {dimension_semantics = [#tpu.dimension_semantics<parallel>], iteration_bounds = array<i64: 2>, scalar_prefetch = 0 : i64, scratch_operands = 3 : i64, tpu.core_type = #tpu.core_type<tc>, window_params = [{transform_indices = @transform_0, window_bounds = array<i64: 1, 32, 256>}, {pipeline_mode = #tpu.pipeline_mode<synchronous>, transform_indices = @transform_1, window_bounds = array<i64: 32, 288>}, {pipeline_mode = #tpu.pipeline_mode<synchronous>, transform_indices = @transform_2, window_bounds = array<i64: 32, 1>}, {pipeline_mode = #tpu.pipeline_mode<synchronous>, transform_indices = @transform_3, window_bounds = array<i64: 32, 288>}, {pipeline_mode = #tpu.pipeline_mode<synchronous>, transform_indices = @transform_4, window_bounds = array<i64: 32, 1>}, {pipeline_mode = #tpu.pipeline_mode<synchronous>, transform_indices = @transform_5, window_bounds = array<i64: 2, 32>}, {pipeline_mode = #tpu.pipeline_mode<synchronous>, transform_indices = @transform_6, window_bounds = array<i64: 2, 1>}, {pipeline_mode = #tpu.pipeline_mode<synchronous>, transform_indices = @transform_7, window_bounds = array<i64: 32, 2>}, {pipeline_mode = #tpu.pipeline_mode<synchronous>, transform_indices = @transform_8, window_bounds = array<i64: 32, 1>}, {transform_indices = @transform_9, window_bounds = array<i64: 1, 32, 256>}]} {
    %0 = tpu.iota {dimensions = array<i32: 1>} : vector<1x256xi32>
    %c16_i32 = arith.constant 16 : i32
    %c0_i32 = arith.constant 0 : i32
    %1 = arith.cmpi eq, %c16_i32, %c0_i32 : i32
    %c1_i32 = arith.constant 1 : i32
    %2 = arith.select %1, %c1_i32, %c16_i32 : i32
    %3 = vector.broadcast %2 : i32 to vector<1x256xi32>
    %4 = arith.remsi %0, %3 : vector<1x256xi32>
    %c0_i32_0 = arith.constant 0 : i32
    %5 = vector.broadcast %c0_i32_0 : i32 to vector<1x256xi32>
    %6 = arith.cmpi ne, %4, %5 : vector<1x256xi32>
    %c0_i32_1 = arith.constant 0 : i32
    %7 = vector.broadcast %c0_i32_1 : i32 to vector<1x256xi32>
    %8 = arith.cmpi slt, %4, %7 : vector<1x256xi32>
    %c0_i32_2 = arith.constant 0 : i32
    %9 = arith.cmpi slt, %2, %c0_i32_2 : i32
    %10 = vector.broadcast %9 : i1 to vector<1x256xi1>
    %11 = vector.broadcast %10 : vector<1x256xi1> to vector<1x256xi1>
    %12 = arith.xori %8, %11 : vector<1x256xi1>
    %13 = arith.andi %12, %6 : vector<1x256xi1>
    %14 = vector.broadcast %2 : i32 to vector<1x256xi32>
    %15 = arith.addi %4, %14 : vector<1x256xi32>
    %16 = arith.select %13, %15, %4 : vector<1x256xi1>, vector<1x256xi32>
    %c0_i32_3 = arith.constant 0 : i32
    %17 = vector.broadcast %c0_i32_3 : i32 to vector<1x256xi32>
    %18 = arith.cmpi eq, %16, %17 : vector<1x256xi32>
    %c15_i32 = arith.constant 15 : i32
    %19 = vector.broadcast %c15_i32 : i32 to vector<1x256xi32>
    %20 = arith.cmpi eq, %16, %19 : vector<1x256xi32>
    %c16_i32_4 = arith.constant 16 : i32
    %21 = vector.broadcast %c16_i32_4 : i32 to vector<1x256xi32>
    %22 = arith.cmpi slt, %0, %21 : vector<1x256xi32>
    %c240_i32 = arith.constant 240 : i32
    %23 = vector.broadcast %c240_i32 : i32 to vector<1x256xi32>
    %24 = arith.cmpi sge, %0, %23 : vector<1x256xi32>
    %c0 = arith.constant 0 : index
    %c0_5 = arith.constant 0 : index
    %25 = vector.load %arg2[%c0, %c0_5] : memref<32x288xf32, #tpu.memory_space<vmem>>, vector<32x288xf32>
    %c0_6 = arith.constant 0 : index
    %c0_7 = arith.constant 0 : index
    %26 = vector.load %arg3[%c0_6, %c0_7] : memref<32x1xf32, #tpu.memory_space<vmem>>, vector<32x1xf32>
    %c0_8 = arith.constant 0 : index
    %c0_9 = arith.constant 0 : index
    %27 = vector.load %arg4[%c0_8, %c0_9] : memref<32x288xf32, #tpu.memory_space<vmem>>, vector<32x288xf32>
    %c0_10 = arith.constant 0 : index
    %c0_11 = arith.constant 0 : index
    %28 = vector.load %arg5[%c0_10, %c0_11] : memref<32x1xf32, #tpu.memory_space<vmem>>, vector<32x1xf32>
    %c0_12 = arith.constant 0 : index
    %c0_13 = arith.constant 0 : index
    %c0_14 = arith.constant 0 : index
    %29 = vector.load %arg1[%c0_12, %c0_13, %c0_14] : memref<1x32x256xf32, #tpu.memory_space<vmem>>, vector<1x32x256xf32>
    %30 = vector.shape_cast %29 : vector<1x32x256xf32> to vector<32x256xf32>
    %c16_i32_15 = arith.constant 16 : i32
    %31 = tpu.dynamic_rotate %30 by %c16_i32_15 dim 1 : vector<32x256xf32>, i32 -> vector<32x256xf32>
    %c240_i32_16 = arith.constant 240 : i32
    %32 = tpu.dynamic_rotate %30 by %c240_i32_16 dim 1 : vector<32x256xf32>, i32 -> vector<32x256xf32>
    %c1_i32_17 = arith.constant 1 : i32
    %33 = tpu.dynamic_rotate %31 by %c1_i32_17 dim 1 : vector<32x256xf32>, i32 -> vector<32x256xf32>
    %c255_i32 = arith.constant 255 : i32
    %34 = tpu.dynamic_rotate %31 by %c255_i32 dim 1 : vector<32x256xf32>, i32 -> vector<32x256xf32>
    %35 = vector.shape_cast %18 : vector<1x256xi1> to vector<1x256xi1>
    %36 = vector.broadcast %35 : vector<1x256xi1> to vector<32x256xi1>
    %37 = arith.select %36, %34, %33 : vector<32x256xi1>, vector<32x256xf32>
    %c1_i32_18 = arith.constant 1 : i32
    %38 = tpu.dynamic_rotate %30 by %c1_i32_18 dim 1 : vector<32x256xf32>, i32 -> vector<32x256xf32>
    %c255_i32_19 = arith.constant 255 : i32
    %39 = tpu.dynamic_rotate %30 by %c255_i32_19 dim 1 : vector<32x256xf32>, i32 -> vector<32x256xf32>
    %40 = vector.shape_cast %18 : vector<1x256xi1> to vector<1x256xi1>
    %41 = vector.broadcast %40 : vector<1x256xi1> to vector<32x256xi1>
    %42 = arith.select %41, %39, %38 : vector<32x256xi1>, vector<32x256xf32>
    %c1_i32_20 = arith.constant 1 : i32
    %43 = tpu.dynamic_rotate %32 by %c1_i32_20 dim 1 : vector<32x256xf32>, i32 -> vector<32x256xf32>
    %c255_i32_21 = arith.constant 255 : i32
    %44 = tpu.dynamic_rotate %32 by %c255_i32_21 dim 1 : vector<32x256xf32>, i32 -> vector<32x256xf32>
    %45 = vector.shape_cast %18 : vector<1x256xi1> to vector<1x256xi1>
    %46 = vector.broadcast %45 : vector<1x256xi1> to vector<32x256xi1>
    %47 = arith.select %46, %44, %43 : vector<32x256xi1>, vector<32x256xf32>
    %48 = vector.shape_cast %22 : vector<1x256xi1> to vector<1x256xi1>
    %49 = vector.broadcast %48 : vector<1x256xi1> to vector<32x256xi1>
    %50 = arith.select %49, %47, %37 : vector<32x256xi1>, vector<32x256xf32>
    %51 = vector.shape_cast %24 : vector<1x256xi1> to vector<1x256xi1>
    %52 = vector.broadcast %51 : vector<1x256xi1> to vector<32x256xi1>
    %53 = arith.select %52, %37, %47 : vector<32x256xi1>, vector<32x256xf32>
    %c0_22 = arith.constant 0 : index
    %c0_23 = arith.constant 0 : index
    %54 = vector.load %arg11[%c0_22, %c0_23] : memref<288x256xf32, #tpu.memory_space<vmem>>, vector<32x256xf32>
    tpu.vector_store %arg11[%c0_22, %c0_23], %50 {strides = array<i32>} : memref<288x256xf32, #tpu.memory_space<vmem>>, vector<32x256xf32>,
    %c96 = arith.constant 96 : index
    %c0_24 = arith.constant 0 : index
    %55 = vector.load %arg11[%c96, %c0_24] : memref<288x256xf32, #tpu.memory_space<vmem>>, vector<32x256xf32>
    tpu.vector_store %arg11[%c96, %c0_24], %42 {strides = array<i32>} : memref<288x256xf32, #tpu.memory_space<vmem>>, vector<32x256xf32>,
    %c192 = arith.constant 192 : index
    %c0_25 = arith.constant 0 : index
    %56 = vector.load %arg11[%c192, %c0_25] : memref<288x256xf32, #tpu.memory_space<vmem>>, vector<32x256xf32>
    tpu.vector_store %arg11[%c192, %c0_25], %53 {strides = array<i32>} : memref<288x256xf32, #tpu.memory_space<vmem>>, vector<32x256xf32>,
    %57 = vector.shape_cast %22 : vector<1x256xi1> to vector<1x256xi1>
    %58 = vector.broadcast %57 : vector<1x256xi1> to vector<32x256xi1>
    %59 = arith.select %58, %32, %31 : vector<32x256xi1>, vector<32x256xf32>
    %60 = vector.shape_cast %24 : vector<1x256xi1> to vector<1x256xi1>
    %61 = vector.broadcast %60 : vector<1x256xi1> to vector<32x256xi1>
    %62 = arith.select %61, %31, %32 : vector<32x256xi1>, vector<32x256xf32>
    %c32 = arith.constant 32 : index
    %c0_26 = arith.constant 0 : index
    %63 = vector.load %arg11[%c32, %c0_26] : memref<288x256xf32, #tpu.memory_space<vmem>>, vector<32x256xf32>
    tpu.vector_store %arg11[%c32, %c0_26], %59 {strides = array<i32>} : memref<288x256xf32, #tpu.memory_space<vmem>>, vector<32x256xf32>,
    %c128 = arith.constant 128 : index
    %c0_27 = arith.constant 0 : index
    %64 = vector.load %arg11[%c128, %c0_27] : memref<288x256xf32, #tpu.memory_space<vmem>>, vector<32x256xf32>
    tpu.vector_store %arg11[%c128, %c0_27], %30 {strides = array<i32>} : memref<288x256xf32, #tpu.memory_space<vmem>>, vector<32x256xf32>,
    %c224 = arith.constant 224 : index
    %c0_28 = arith.constant 0 : index
    %65 = vector.load %arg11[%c224, %c0_28] : memref<288x256xf32, #tpu.memory_space<vmem>>, vector<32x256xf32>
    tpu.vector_store %arg11[%c224, %c0_28], %62 {strides = array<i32>} : memref<288x256xf32, #tpu.memory_space<vmem>>, vector<32x256xf32>,
    %c255_i32_29 = arith.constant 255 : i32
    %66 = tpu.dynamic_rotate %31 by %c255_i32_29 dim 1 : vector<32x256xf32>, i32 -> vector<32x256xf32>
    %c1_i32_30 = arith.constant 1 : i32
    %67 = tpu.dynamic_rotate %31 by %c1_i32_30 dim 1 : vector<32x256xf32>, i32 -> vector<32x256xf32>
    %68 = vector.shape_cast %20 : vector<1x256xi1> to vector<1x256xi1>
    %69 = vector.broadcast %68 : vector<1x256xi1> to vector<32x256xi1>
    %70 = arith.select %69, %67, %66 : vector<32x256xi1>, vector<32x256xf32>
    %c255_i32_31 = arith.constant 255 : i32
    %71 = tpu.dynamic_rotate %30 by %c255_i32_31 dim 1 : vector<32x256xf32>, i32 -> vector<32x256xf32>
    %c1_i32_32 = arith.constant 1 : i32
    %72 = tpu.dynamic_rotate %30 by %c1_i32_32 dim 1 : vector<32x256xf32>, i32 -> vector<32x256xf32>
    %73 = vector.shape_cast %20 : vector<1x256xi1> to vector<1x256xi1>
    %74 = vector.broadcast %73 : vector<1x256xi1> to vector<32x256xi1>
    %75 = arith.select %74, %72, %71 : vector<32x256xi1>, vector<32x256xf32>
    %c255_i32_33 = arith.constant 255 : i32
    %76 = tpu.dynamic_rotate %32 by %c255_i32_33 dim 1 : vector<32x256xf32>, i32 -> vector<32x256xf32>
    %c1_i32_34 = arith.constant 1 : i32
    %77 = tpu.dynamic_rotate %32 by %c1_i32_34 dim 1 : vector<32x256xf32>, i32 -> vector<32x256xf32>
    %78 = vector.shape_cast %20 : vector<1x256xi1> to vector<1x256xi1>
    %79 = vector.broadcast %78 : vector<1x256xi1> to vector<32x256xi1>
    %80 = arith.select %79, %77, %76 : vector<32x256xi1>, vector<32x256xf32>
    %81 = vector.shape_cast %22 : vector<1x256xi1> to vector<1x256xi1>
    %82 = vector.broadcast %81 : vector<1x256xi1> to vector<32x256xi1>
    %83 = arith.select %82, %80, %70 : vector<32x256xi1>, vector<32x256xf32>
    %84 = vector.shape_cast %24 : vector<1x256xi1> to vector<1x256xi1>
    %85 = vector.broadcast %84 : vector<1x256xi1> to vector<32x256xi1>
    %86 = arith.select %85, %70, %80 : vector<32x256xi1>, vector<32x256xf32>
    %c64 = arith.constant 64 : index
    %c0_35 = arith.constant 0 : index
    %87 = vector.load %arg11[%c64, %c0_35] : memref<288x256xf32, #tpu.memory_space<vmem>>, vector<32x256xf32>
    tpu.vector_store %arg11[%c64, %c0_35], %83 {strides = array<i32>} : memref<288x256xf32, #tpu.memory_space<vmem>>, vector<32x256xf32>,
    %c160 = arith.constant 160 : index
    %c0_36 = arith.constant 0 : index
    %88 = vector.load %arg11[%c160, %c0_36] : memref<288x256xf32, #tpu.memory_space<vmem>>, vector<32x256xf32>
    tpu.vector_store %arg11[%c160, %c0_36], %75 {strides = array<i32>} : memref<288x256xf32, #tpu.memory_space<vmem>>, vector<32x256xf32>,
    %c256 = arith.constant 256 : index
    %c0_37 = arith.constant 0 : index
    %89 = vector.load %arg11[%c256, %c0_37] : memref<288x256xf32, #tpu.memory_space<vmem>>, vector<32x256xf32>
    tpu.vector_store %arg11[%c256, %c0_37], %86 {strides = array<i32>} : memref<288x256xf32, #tpu.memory_space<vmem>>, vector<32x256xf32>,
    %c0_38 = arith.constant 0 : index
    %c0_39 = arith.constant 0 : index
    %90 = vector.load %arg11[%c0_38, %c0_39] : memref<288x256xf32, #tpu.memory_space<vmem>>, vector<288x256xf32>
    %cst = arith.constant dense<0.000000e+00> : vector<32x256xf32>
    %91 = tpu.matmul %25, %90, %cst {dimension_numbers = #tpu.dot_dimension_numbers<[1], [0], [0], [1], [0, 0, 1, 1], [], []>} : vector<32x288xf32>, vector<288x256xf32>, vector<32x256xf32> -> vector<32x256xf32>
    %92 = vector.broadcast %26 : vector<32x1xf32> to vector<32x256xf32>
    %93 = arith.addf %91, %92 : vector<32x256xf32>
    %cst_40 = arith.constant 0.000000e+00 : f32
    %94 = vector.broadcast %cst_40 : f32 to vector<32x256xf32>
    %95 = arith.cmpf oge, %93, %94 : vector<32x256xf32>
    %cst_41 = arith.constant 0.00999999977 : f32
    %96 = vector.broadcast %cst_41 : f32 to vector<32x256xf32>
    %97 = arith.mulf %96, %93 : vector<32x256xf32>
    %98 = arith.select %95, %93, %97 : vector<32x256xi1>, vector<32x256xf32>
    %c0_42 = arith.constant 0 : index
    %c0_43 = arith.constant 0 : index
    %99 = vector.load %arg12[%c0_42, %c0_43] : memref<32x256xf32, #tpu.memory_space<vmem>>, vector<32x256xf32>
    tpu.vector_store %arg12[%c0_42, %c0_43], %98 {strides = array<i32>} : memref<32x256xf32, #tpu.memory_space<vmem>>, vector<32x256xf32>,
    %c0_44 = arith.constant 0 : index
    %c0_45 = arith.constant 0 : index
    %100 = vector.load %arg12[%c0_44, %c0_45] : memref<32x256xf32, #tpu.memory_space<vmem>>, vector<32x256xf32>
    %c16_i32_46 = arith.constant 16 : i32
    %101 = tpu.dynamic_rotate %100 by %c16_i32_46 dim 1 : vector<32x256xf32>, i32 -> vector<32x256xf32>
    %c240_i32_47 = arith.constant 240 : i32
    %102 = tpu.dynamic_rotate %100 by %c240_i32_47 dim 1 : vector<32x256xf32>, i32 -> vector<32x256xf32>
    %c1_i32_48 = arith.constant 1 : i32
    %103 = tpu.dynamic_rotate %101 by %c1_i32_48 dim 1 : vector<32x256xf32>, i32 -> vector<32x256xf32>
    %c255_i32_49 = arith.constant 255 : i32
    %104 = tpu.dynamic_rotate %101 by %c255_i32_49 dim 1 : vector<32x256xf32>, i32 -> vector<32x256xf32>
    %105 = vector.shape_cast %18 : vector<1x256xi1> to vector<1x256xi1>
    %106 = vector.broadcast %105 : vector<1x256xi1> to vector<32x256xi1>
    %107 = arith.select %106, %104, %103 : vector<32x256xi1>, vector<32x256xf32>
    %c1_i32_50 = arith.constant 1 : i32
    %108 = tpu.dynamic_rotate %100 by %c1_i32_50 dim 1 : vector<32x256xf32>, i32 -> vector<32x256xf32>
    %c255_i32_51 = arith.constant 255 : i32
    %109 = tpu.dynamic_rotate %100 by %c255_i32_51 dim 1 : vector<32x256xf32>, i32 -> vector<32x256xf32>
    %110 = vector.shape_cast %18 : vector<1x256xi1> to vector<1x256xi1>
    %111 = vector.broadcast %110 : vector<1x256xi1> to vector<32x256xi1>
    %112 = arith.select %111, %109, %108 : vector<32x256xi1>, vector<32x256xf32>
    %c1_i32_52 = arith.constant 1 : i32
    %113 = tpu.dynamic_rotate %102 by %c1_i32_52 dim 1 : vector<32x256xf32>, i32 -> vector<32x256xf32>
    %c255_i32_53 = arith.constant 255 : i32
    %114 = tpu.dynamic_rotate %102 by %c255_i32_53 dim 1 : vector<32x256xf32>, i32 -> vector<32x256xf32>
    %115 = vector.shape_cast %18 : vector<1x256xi1> to vector<1x256xi1>
    %116 = vector.broadcast %115 : vector<1x256xi1> to vector<32x256xi1>
    %117 = arith.select %116, %114, %113 : vector<32x256xi1>, vector<32x256xf32>
    %118 = vector.shape_cast %22 : vector<1x256xi1> to vector<1x256xi1>
    %119 = vector.broadcast %118 : vector<1x256xi1> to vector<32x256xi1>
    %120 = arith.select %119, %117, %107 : vector<32x256xi1>, vector<32x256xf32>
    %121 = vector.shape_cast %24 : vector<1x256xi1> to vector<1x256xi1>
    %122 = vector.broadcast %121 : vector<1x256xi1> to vector<32x256xi1>
    %123 = arith.select %122, %107, %117 : vector<32x256xi1>, vector<32x256xf32>
    %c0_54 = arith.constant 0 : index
    %c0_55 = arith.constant 0 : index
    %124 = vector.load %arg11[%c0_54, %c0_55] : memref<288x256xf32, #tpu.memory_space<vmem>>, vector<32x256xf32>
    tpu.vector_store %arg11[%c0_54, %c0_55], %120 {strides = array<i32>} : memref<288x256xf32, #tpu.memory_space<vmem>>, vector<32x256xf32>,
    %c96_56 = arith.constant 96 : index
    %c0_57 = arith.constant 0 : index
    %125 = vector.load %arg11[%c96_56, %c0_57] : memref<288x256xf32, #tpu.memory_space<vmem>>, vector<32x256xf32>
    tpu.vector_store %arg11[%c96_56, %c0_57], %112 {strides = array<i32>} : memref<288x256xf32, #tpu.memory_space<vmem>>, vector<32x256xf32>,
    %c192_58 = arith.constant 192 : index
    %c0_59 = arith.constant 0 : index
    %126 = vector.load %arg11[%c192_58, %c0_59] : memref<288x256xf32, #tpu.memory_space<vmem>>, vector<32x256xf32>
    tpu.vector_store %arg11[%c192_58, %c0_59], %123 {strides = array<i32>} : memref<288x256xf32, #tpu.memory_space<vmem>>, vector<32x256xf32>,
    %127 = vector.shape_cast %22 : vector<1x256xi1> to vector<1x256xi1>
    %128 = vector.broadcast %127 : vector<1x256xi1> to vector<32x256xi1>
    %129 = arith.select %128, %102, %101 : vector<32x256xi1>, vector<32x256xf32>
    %130 = vector.shape_cast %24 : vector<1x256xi1> to vector<1x256xi1>
    %131 = vector.broadcast %130 : vector<1x256xi1> to vector<32x256xi1>
    %132 = arith.select %131, %101, %102 : vector<32x256xi1>, vector<32x256xf32>
    %c32_60 = arith.constant 32 : index
    %c0_61 = arith.constant 0 : index
    %133 = vector.load %arg11[%c32_60, %c0_61] : memref<288x256xf32, #tpu.memory_space<vmem>>, vector<32x256xf32>
    tpu.vector_store %arg11[%c32_60, %c0_61], %129 {strides = array<i32>} : memref<288x256xf32, #tpu.memory_space<vmem>>, vector<32x256xf32>,
    %c128_62 = arith.constant 128 : index
    %c0_63 = arith.constant 0 : index
    %134 = vector.load %arg11[%c128_62, %c0_63] : memref<288x256xf32, #tpu.memory_space<vmem>>, vector<32x256xf32>
    tpu.vector_store %arg11[%c128_62, %c0_63], %100 {strides = array<i32>} : memref<288x256xf32, #tpu.memory_space<vmem>>, vector<32x256xf32>,
    %c224_64 = arith.constant 224 : index
    %c0_65 = arith.constant 0 : index
    %135 = vector.load %arg11[%c224_64, %c0_65] : memref<288x256xf32, #tpu.memory_space<vmem>>, vector<32x256xf32>
    tpu.vector_store %arg11[%c224_64, %c0_65], %132 {strides = array<i32>} : memref<288x256xf32, #tpu.memory_space<vmem>>, vector<32x256xf32>,
    %c255_i32_66 = arith.constant 255 : i32
    %136 = tpu.dynamic_rotate %101 by %c255_i32_66 dim 1 : vector<32x256xf32>, i32 -> vector<32x256xf32>
    %c1_i32_67 = arith.constant 1 : i32
    %137 = tpu.dynamic_rotate %101 by %c1_i32_67 dim 1 : vector<32x256xf32>, i32 -> vector<32x256xf32>
    %138 = vector.shape_cast %20 : vector<1x256xi1> to vector<1x256xi1>
    %139 = vector.broadcast %138 : vector<1x256xi1> to vector<32x256xi1>
    %140 = arith.select %139, %137, %136 : vector<32x256xi1>, vector<32x256xf32>
    %c255_i32_68 = arith.constant 255 : i32
    %141 = tpu.dynamic_rotate %100 by %c255_i32_68 dim 1 : vector<32x256xf32>, i32 -> vector<32x256xf32>
    %c1_i32_69 = arith.constant 1 : i32
    %142 = tpu.dynamic_rotate %100 by %c1_i32_69 dim 1 : vector<32x256xf32>, i32 -> vector<32x256xf32>
    %143 = vector.shape_cast %20 : vector<1x256xi1> to vector<1x256xi1>
    %144 = vector.broadcast %143 : vector<1x256xi1> to vector<32x256xi1>
    %145 = arith.select %144, %142, %141 : vector<32x256xi1>, vector<32x256xf32>
    %c255_i32_70 = arith.constant 255 : i32
    %146 = tpu.dynamic_rotate %102 by %c255_i32_70 dim 1 : vector<32x256xf32>, i32 -> vector<32x256xf32>
    %c1_i32_71 = arith.constant 1 : i32
    %147 = tpu.dynamic_rotate %102 by %c1_i32_71 dim 1 : vector<32x256xf32>, i32 -> vector<32x256xf32>
    %148 = vector.shape_cast %20 : vector<1x256xi1> to vector<1x256xi1>
    %149 = vector.broadcast %148 : vector<1x256xi1> to vector<32x256xi1>
    %150 = arith.select %149, %147, %146 : vector<32x256xi1>, vector<32x256xf32>
    %151 = vector.shape_cast %22 : vector<1x256xi1> to vector<1x256xi1>
    %152 = vector.broadcast %151 : vector<1x256xi1> to vector<32x256xi1>
    %153 = arith.select %152, %150, %140 : vector<32x256xi1>, vector<32x256xf32>
    %154 = vector.shape_cast %24 : vector<1x256xi1> to vector<1x256xi1>
    %155 = vector.broadcast %154 : vector<1x256xi1> to vector<32x256xi1>
    %156 = arith.select %155, %140, %150 : vector<32x256xi1>, vector<32x256xf32>
    %c64_72 = arith.constant 64 : index
    %c0_73 = arith.constant 0 : index
    %157 = vector.load %arg11[%c64_72, %c0_73] : memref<288x256xf32, #tpu.memory_space<vmem>>, vector<32x256xf32>
    tpu.vector_store %arg11[%c64_72, %c0_73], %153 {strides = array<i32>} : memref<288x256xf32, #tpu.memory_space<vmem>>, vector<32x256xf32>,
    %c160_74 = arith.constant 160 : index
    %c0_75 = arith.constant 0 : index
    %158 = vector.load %arg11[%c160_74, %c0_75] : memref<288x256xf32, #tpu.memory_space<vmem>>, vector<32x256xf32>
    tpu.vector_store %arg11[%c160_74, %c0_75], %145 {strides = array<i32>} : memref<288x256xf32, #tpu.memory_space<vmem>>, vector<32x256xf32>,
    %c256_76 = arith.constant 256 : index
    %c0_77 = arith.constant 0 : index
    %159 = vector.load %arg11[%c256_76, %c0_77] : memref<288x256xf32, #tpu.memory_space<vmem>>, vector<32x256xf32>
    tpu.vector_store %arg11[%c256_76, %c0_77], %156 {strides = array<i32>} : memref<288x256xf32, #tpu.memory_space<vmem>>, vector<32x256xf32>,
    %c0_78 = arith.constant 0 : index
    %c0_79 = arith.constant 0 : index
    %160 = vector.load %arg11[%c0_78, %c0_79] : memref<288x256xf32, #tpu.memory_space<vmem>>, vector<288x256xf32>
    %cst_80 = arith.constant dense<0.000000e+00> : vector<32x256xf32>
    %161 = tpu.matmul %27, %160, %cst_80 {dimension_numbers = #tpu.dot_dimension_numbers<[1], [0], [0], [1], [0, 0, 1, 1], [], []>} : vector<32x288xf32>, vector<288x256xf32>, vector<32x256xf32> -> vector<32x256xf32>
    %162 = vector.broadcast %28 : vector<32x1xf32> to vector<32x256xf32>
    %163 = arith.addf %161, %162 : vector<32x256xf32>
    %c0_81 = arith.constant 0 : index
    %c0_82 = arith.constant 0 : index
    %164 = vector.load %arg13[%c0_81, %c0_82] : memref<32x256xf32, #tpu.memory_space<vmem>>, vector<32x256xf32>
    tpu.vector_store %arg13[%c0_81, %c0_82], %163 {strides = array<i32>} : memref<32x256xf32, #tpu.memory_space<vmem>>, vector<32x256xf32>,
    %c0_83 = arith.constant 0 : index
    %c0_84 = arith.constant 0 : index
    %165 = vector.load %arg13[%c0_83, %c0_84] : memref<32x256xf32, #tpu.memory_space<vmem>>, vector<32x256xf32>
    %cst_85 = arith.constant dense<0.000000e+00> : vector<32xf32>
    %166 = vector.multi_reduction <add>, %165, %cst_85 [1] : vector<32x256xf32> to vector<32xf32>
    %167 = vector.shape_cast %166 : vector<32xf32> to vector<32x1xf32>
    %cst_86 = arith.constant 3.906250e-03 : f32
    %168 = vector.broadcast %cst_86 : f32 to vector<32x1xf32>
    %169 = arith.mulf %167, %168 : vector<32x1xf32>
    %c0_87 = arith.constant 0 : index
    %c0_88 = arith.constant 0 : index
    %170 = vector.load %arg6[%c0_87, %c0_88] : memref<2x32xf32, #tpu.memory_space<vmem>>, vector<2x32xf32>
    %cst_89 = arith.constant dense<0.000000e+00> : vector<2x1xf32>
    %171 = tpu.matmul %170, %169, %cst_89 {dimension_numbers = #tpu.dot_dimension_numbers<[1], [0], [0], [1], [0, 0, 1, 1], [], []>} : vector<2x32xf32>, vector<32x1xf32>, vector<2x1xf32> -> vector<2x1xf32>
    %c0_90 = arith.constant 0 : index
    %c0_91 = arith.constant 0 : index
    %172 = vector.load %arg7[%c0_90, %c0_91] : memref<2x1xf32, #tpu.memory_space<vmem>>, vector<2x1xf32>
    %173 = arith.addf %171, %172 : vector<2x1xf32>
    %c0_92 = arith.constant 0 : index
    %c0_93 = arith.constant 0 : index
    %174 = vector.load %arg8[%c0_92, %c0_93] : memref<32x2xf32, #tpu.memory_space<vmem>>, vector<32x2xf32>
    %cst_94 = arith.constant 0.000000e+00 : f32
    %175 = vector.broadcast %cst_94 : f32 to vector<2x1xf32>
    %176 = arith.cmpf oge, %173, %175 : vector<2x1xf32>
    %cst_95 = arith.constant 0.00999999977 : f32
    %177 = vector.broadcast %cst_95 : f32 to vector<2x1xf32>
    %178 = arith.mulf %177, %173 : vector<2x1xf32>
    %179 = arith.select %176, %173, %178 : vector<2x1xi1>, vector<2x1xf32>
    %cst_96 = arith.constant dense<0.000000e+00> : vector<32x1xf32>
    %180 = tpu.matmul %174, %179, %cst_96 {dimension_numbers = #tpu.dot_dimension_numbers<[1], [0], [0], [1], [0, 0, 1, 1], [], []>} : vector<32x2xf32>, vector<2x1xf32>, vector<32x1xf32> -> vector<32x1xf32>
    %c0_97 = arith.constant 0 : index
    %c0_98 = arith.constant 0 : index
    %181 = vector.load %arg9[%c0_97, %c0_98] : memref<32x1xf32, #tpu.memory_space<vmem>>, vector<32x1xf32>
    %182 = arith.addf %180, %181 : vector<32x1xf32>
    %183 = arith.negf %182 : vector<32x1xf32>
    %184 = math.exp %183 : vector<32x1xf32>
    %cst_99 = arith.constant 1.000000e+00 : f32
    %185 = vector.broadcast %cst_99 : f32 to vector<32x1xf32>
    %186 = arith.addf %185, %184 : vector<32x1xf32>
    %187 = arith.divf %185, %186 : vector<32x1xf32>
    %c0_100 = arith.constant 0 : index
    %c0_101 = arith.constant 0 : index
    %188 = vector.load %arg13[%c0_100, %c0_101] : memref<32x256xf32, #tpu.memory_space<vmem>>, vector<32x256xf32>
    %189 = vector.broadcast %187 : vector<32x1xf32> to vector<32x256xf32>
    %190 = arith.mulf %188, %189 : vector<32x256xf32>
    %c0_102 = arith.constant 0 : index
    %c0_103 = arith.constant 0 : index
    %c0_104 = arith.constant 0 : index
    %191 = vector.load %arg1[%c0_102, %c0_103, %c0_104] : memref<1x32x256xf32, #tpu.memory_space<vmem>>, vector<1x32x256xf32>
    %192 = vector.shape_cast %191 : vector<1x32x256xf32> to vector<32x256xf32>
    %193 = arith.addf %190, %192 : vector<32x256xf32>
    %c0_105 = arith.constant 0 : index
    %c0_106 = arith.constant 0 : index
    %c0_107 = arith.constant 0 : index
    %194 = vector.load %arg10[%c0_105, %c0_106, %c0_107] : memref<1x32x256xf32, #tpu.memory_space<vmem>>, vector<1x32x256xf32>
    %195 = vector.shape_cast %194 : vector<1x32x256xf32> to vector<32x256xf32>
    %196 = vector.shape_cast %193 : vector<32x256xf32> to vector<1x32x256xf32>
    tpu.vector_store %arg10[%c0_105, %c0_106, %c0_107], %196 {strides = array<i32>} : memref<1x32x256xf32, #tpu.memory_space<vmem>>, vector<1x32x256xf32>,
    return
  }
  func.func @transform_0(%arg0: i32) -> (i32, i32, i32) {
    %c0_i32 = arith.constant 0 : i32
    %c0_i32_0 = arith.constant 0 : i32
    %c0_i32_1 = arith.constant 0 : i32
    return %arg0, %c0_i32, %c0_i32_0 : i32, i32, i32
  }
  func.func @transform_1(%arg0: i32) -> (i32, i32) {
    %c0_i32 = arith.constant 0 : i32
    %c0_i32_0 = arith.constant 0 : i32
    %c0_i32_1 = arith.constant 0 : i32
    return %c0_i32, %c0_i32_0 : i32, i32
  }
  func.func @transform_2(%arg0: i32) -> (i32, i32) {
    %c0_i32 = arith.constant 0 : i32
    %c0_i32_0 = arith.constant 0 : i32
    %c0_i32_1 = arith.constant 0 : i32
    return %c0_i32, %c0_i32_0 : i32, i32
  }
  func.func @transform_3(%arg0: i32) -> (i32, i32) {
    %c0_i32 = arith.constant 0 : i32
    %c0_i32_0 = arith.constant 0 : i32
    %c0_i32_1 = arith.constant 0 : i32
    return %c0_i32, %c0_i32_0 : i32, i32
  }
  func.func @transform_4(%arg0: i32) -> (i32, i32) {
    %c0_i32 = arith.constant 0 : i32
    %c0_i32_0 = arith.constant 0 : i32
    %c0_i32_1 = arith.constant 0 : i32
    return %c0_i32, %c0_i32_0 : i32, i32
  }
  func.func @transform_5(%arg0: i32) -> (i32, i32) {
    %c0_i32 = arith.constant 0 : i32
    %c0_i32_0 = arith.constant 0 : i32
    %c0_i32_1 = arith.constant 0 : i32
    return %c0_i32, %c0_i32_0 : i32, i32
  }
  func.func @transform_6(%arg0: i32) -> (i32, i32) {
    %c0_i32 = arith.constant 0 : i32
    %c0_i32_0 = arith.constant 0 : i32
    %c0_i32_1 = arith.constant 0 : i32
    return %c0_i32, %c0_i32_0 : i32, i32
  }
  func.func @transform_7(%arg0: i32) -> (i32, i32) {
    %c0_i32 = arith.constant 0 : i32
    %c0_i32_0 = arith.constant 0 : i32
    %c0_i32_1 = arith.constant 0 : i32
    return %c0_i32, %c0_i32_0 : i32, i32
  }
  func.func @transform_8(%arg0: i32) -> (i32, i32) {
    %c0_i32 = arith.constant 0 : i32
    %c0_i32_0 = arith.constant 0 : i32
    %c0_i32_1 = arith.constant 0 : i32
    return %c0_i32, %c0_i32_0 : i32, i32
  }
  func.func @transform_9(%arg0: i32) -> (i32, i32, i32) {
    %c0_i32 = arith.constant 0 : i32
    %c0_i32_0 = arith.constant 0 : i32
    %c0_i32_1 = arith.constant 0 : i32
    return %arg0, %c0_i32, %c0_i32_0 : i32, i32, i32
  }
}

</mosaic_0001>

<bundles_post_ra>
// kernel: resblock_pallas.1
= control target key start
LH: loop header
LB: loop body
LE: loop exit
PB: predicated region body
PF: predicated region fallthrough
CT: control target
= control target key end

     0   :  { %s2765_s30 = smov 0   ;;  %s4354_s0 = inlined_call_operand.vmem [shape: f32[2,32,256], index: 0, kind: input, shape index: {}]   ;;  %s4355_s1 = inlined_call_operand.vmem [shape: f32[32,288], index: 1, kind: input, shape index: {}]   ;;  %s4356_s2 = inlined_call_operand.vmem [shape: f32[32,1], index: 2, kind: input, shape index: {}]   ;;  %s4357_s3 = inlined_call_operand.vmem [shape: f32[32,288], index: 3, kind: input, shape index: {}]   ;;  %s4358_s4 = inlined_call_operand.vmem [shape: f32[32,1], index: 4, kind: input, shape index: {}]   ;;  %s4359_s5 = inlined_call_operand.vmem [shape: f32[2,32], index: 5, kind: input, shape index: {}]   ;;  %s4360_s6 = inlined_call_operand.vmem [shape: f32[2,1], index: 6, kind: input, shape index: {}]   ;;  %s4361_s7 = inlined_call_operand.vmem [shape: f32[32,2], index: 7, kind: input, shape index: {}]   ;;  %s4362_s8 = inlined_call_operand.vmem [shape: f32[32,1], index: 8, kind: input, shape index: {}]   ;;  %s4363_s9 = inlined_call_operand.vmem [shape: f32[2,32,256], index: 9, kind: output, shape index: {}]  }
   0x1 LB: > { %s2103_s10 = sadd.s32 4294967295, %s2705_s30   ;;  %p2107_p0 = scmp.ge.s32.totalorder %s2705_s30, 1  ;;  %s2705_s30 = sphi %s2765_s30, %s19_s30  }
   0x2   : > { %p287_p1 = scmp.lt.s32.totalorder %s2705_s30, 3 }
   0x4   : > { %p288_p2 = pnand %p2107_p0, %p287_p1 }
   0x6   : > { %291 = sbr.rel (%p288_p2) target bundleno = 1916 (0x77c), region = 56 }
   0xd   : > { %p323_p3 = scmp.lt.s32.totalorder %s2103_s10, 1  ;;  %s2707_s15 = smov 112   ;;  %v333_v12 = vlaneseq  ;;  %vm879_vm9 = vcmask 261120  }
   0xe   : > { %s2708_s16 = smov 16   ;;  %s2709_s17 = smov 1  }
   0xf   : > { %s4539_s10 = smov (!%p323_p3, %s2103_s10), 1  ;;  %v2839_v15 = vand.u32 127, %v333_v12  ;;  %s2710_s18 = smov 127  }
  0x10   : > { %s2132_s11 = sshll.u32 %s4539_s10, 6 }
  0x11   : > { %s2781_s14 = scalar_lea.vmem %s4354_s0, %s2132_s11  ;;  %vm364_vm0 = vcmp.lt.s32.totalorder %v2839_v15, 16  ;;  %vm448_vm1 = vcmp.lt.s32.totalorder %v2839_v15, 112  ;;  %v2844_v24 = vadd.s32 128, %v2839_v15  ;;  %vm473_vm3 = vcmp.lt.s32.totalorder %v2839_v15, 1  ;;  %s332_s26 = scalar_lea.vmem %s4363_s9, %s2132_s11 }
  0x12   : > { %v2784_v0 = vld [vmem:[%s2781_s14] sm:$0xff]  ;;  %v2787_v1 = vld [vmem:[%s2781_s14 + $0x10] sm:$0xff]  ;;  %v2790_v2 = vld [vmem:[%s2781_s14 + $0x8] sm:$0xff]  ;;  %vm498_vm4 = vcmp.lt.s32.totalorder %v2839_v15, 127 }
  0x13   : > { %v2794_v3 = vpack.i.bf16 %v2787_v1, %v2784_v0  ;;  %v2797_v4 = vld [vmem:[%s2781_s14 + $0x18] sm:$0xff]  ;;  %v2808_v6 = vld [vmem:[%s2781_s14 + $0x28] sm:$0xff]  ;;  %v2814_v8 = vld [vmem:[%s2781_s14 + $0x20] sm:$0xff]  ;;  %vm367_vm2 = vcmp.ge.s32.totalorder %v2844_v24, 240 }
  0x14   : > { %v2805_v5 = vpack.i.bf16 %v2797_v4, %v2790_v2  ;;  %v2811_v7 = vld [vmem:[%s2781_s14 + $0x38] sm:$0xff]  ;;  %v2817_v9 = vld [vmem:[%s2781_s14 + $0x30] sm:$0xff] }
  0x15   : > { %2372 = vrot.lane.b32.xlu1 %v2794_v3, %s2707_s15  ;;  %2362 = vrot.lane.b32.xlu0 %v2794_v3, %s2708_s16  ;;  %v2825_v10 = vpack.i.bf16 %v2811_v7, %v2808_v6  ;;  %v2829_v11 = vpack.i.bf16 %v2817_v9, %v2814_v8 }
  0x19   : > { %2377 = vrot.lane.b32.xlu1 %v2805_v5, %s2707_s15  ;;  %2367 = vrot.lane.b32.xlu0 %v2805_v5, %s2708_s16 }
  0x1d   : > { %2387 = vrot.lane.b32.xlu1 %v2825_v10, %s2708_s16  ;;  %2382 = vrot.lane.b32.xlu0 %v2829_v11, %s2708_s16 }
  0x21   : > { %2397 = vrot.lane.b32.xlu1 %v2825_v10, %s2707_s15  ;;  %2392 = vrot.lane.b32.xlu0 %v2829_v11, %s2707_s15 }
  0x87   : > { %v2373_v13 = vpop.permute.xlu1 %2372  ;;  %v2363_v14 = vpop.permute.xlu0 %2362 }
  0x88   : > { %v2374_v16 = vunpack.i.l.bf16 %v2373_v13  ;;  %v2365_v17 = vunpack.i.h.bf16 %v2363_v14  ;;  %v2364_v20 = vunpack.i.l.bf16 %v2363_v14  ;;  %v2375_v25 = vunpack.i.h.bf16 %v2373_v13 }
  0x8b   : > { %v2378_v18 = vpop.permute.xlu1 %2377  ;;  %v2368_v19 = vpop.permute.xlu0 %2367 }
  0x8c   : > { %v2379_v21 = vunpack.i.l.bf16 %v2378_v18  ;;  %v2370_v22 = vunpack.i.h.bf16 %v2368_v19  ;;  %v2369_v23 = vunpack.i.l.bf16 %v2368_v19  ;;  %v2380_v26 = vunpack.i.h.bf16 %v2378_v18 }
  0x8e   : > { %v2848_v27 = vsel %vm364_vm0, %v2364_v20, %v2369_v23  ;;  %v2852_v28 = vsel %vm364_vm0, %v2365_v17, %v2370_v22  ;;  %v2856_v29 = vsel %vm448_vm1, %v2374_v16, %v2379_v21  ;;  %v428_v30 = vsel %vm364_vm0, %v2369_v23, %v2364_v20 }
  0x8f   : > { %4409 = vst [vmem:[#allocation5_spill] sm:$0xff] %v2856_v29  ;;  %v429_v31 = vsel %vm364_vm0, %v2370_v22, %v2365_v17  ;;  %v2406_v32 = vpack.i.bf16 %v2852_v28, %v2848_v27  ;;  %v2388_v33 = vpop.permute.xlu1 %2387  ;;  %v2383_v34 = vpop.permute.xlu0 %2382  ;;  %v2871_v41 = vsel %vm364_vm0, %v2856_v29, %v428_v30  ;;  %v2876_v42 = vsel %vm448_vm1, %v2375_v25, %v2380_v26 }
  0x90   : > { %v2401_v35 = vpack.i.bf16 %v429_v31, %v428_v30  ;;  %v2390_v36 = vunpack.i.h.bf16 %v2388_v33  ;;  %v2389_v37 = vunpack.i.l.bf16 %v2388_v33  ;;  %v2385_v38 = vunpack.i.h.bf16 %v2383_v34  ;;  %4410 = vst [vmem:[#allocation6_spill] sm:$0xff] %v2876_v42 }
  0x91   : > { %2407 = vrot.lane.b32.xlu1 %v2406_v32, %s2709_s17  ;;  %v2384_v39 = vunpack.i.l.bf16 %v2383_v34  ;;  %v453_v51 = vsel %vm448_vm1, %v2379_v21, %v2374_v16  ;;  %v454_v52 = vsel %vm448_vm1, %v2380_v26, %v2375_v25  ;;  %v2421_v59 = vpack.i.bf16 %v2876_v42, %v2856_v29 }
  0x92   : > { %2402 = vrot.lane.b32.xlu0 %v2401_v35, %s2709_s17  ;;  %v2881_v49 = vsel %vm364_vm0, %v2385_v38, %v2390_v36  ;;  %v431_v56 = vsel %vm364_vm0, %v2390_v36, %v2385_v38  ;;  %v2426_v57 = vpack.i.bf16 %v454_v52, %v453_v51  ;;  %v2913_v61 = vsel %vm364_vm0, %v2876_v42, %v429_v31 }
  0x93   : > { %v2398_v43 = vpop.permute.xlu1 %2397  ;;  %v2393_v44 = vpop.permute.xlu0 %2392  ;;  %v2885_v50 = vsel %vm364_vm0, %v2384_v39, %v2389_v37  ;;  %v430_v55 = vsel %vm364_vm0, %v2389_v37, %v2384_v39  ;;  %v2933_v14 = vsel %vm367_vm2, %v2848_v27, %v453_v51  ;;  %v2941_v17 = vsel %vm367_vm2, %v2852_v28, %v454_v52 }
  0x94   : > { %v2400_v45 = vunpack.i.h.bf16 %v2398_v43  ;;  %v2399_v46 = vunpack.i.l.bf16 %v2398_v43  ;;  %v2395_v47 = vunpack.i.h.bf16 %v2393_v44  ;;  %v2394_v48 = vunpack.i.l.bf16 %v2393_v44  ;;  %4413 = vst [vmem:[#allocation9_spill] sm:$0xff] %v2933_v14  ;;  %4414 = vst [vmem:[#allocation10_spill] sm:$0xff] %v2941_v17  ;;  %v388_v17 = vld [vmem:[%s4357_s3 + $0x20] sm:$0xff] }
  0x95   : > { %2417 = vrot.lane.b32.xlu1 %v2406_v32, %s2710_s18  ;;  %v2446_v25 = vpack.i.bf16 %v2881_v49, %v2885_v50  ;;  %v2441_v26 = vpack.i.bf16 %v431_v56, %v430_v55  ;;  %v369_v32 = vld [vmem:[%s4355_s1 + $0x8] sm:$0xff]  ;;  %v2711_v33 = vmov 0   ;;  %v4365_v36 = vand.u32 15, %v2844_v24 }
  0x96   : > { %2412 = vrot.lane.b32.xlu0 %v2401_v35, %s2710_s18  ;;  %v2894_v53 = vsel %vm448_vm1, %v2395_v47, %v2400_v45  ;;  %v2898_v54 = vsel %vm448_vm1, %v2394_v48, %v2399_v46  ;;  %v455_v58 = vsel %vm448_vm1, %v2399_v46, %v2394_v48  ;;  %v456_v60 = vsel %vm448_vm1, %v2400_v45, %v2395_v47 }
  0x97   : > { %4411 = vst [vmem:[#allocation7_spill] sm:$0xff] %v2894_v53  ;;  %4412 = vst [vmem:[#allocation8_spill] sm:$0xff] %v2898_v54  ;;  %v2923_v12 = vsel %vm364_vm0, %v2898_v54, %v430_v55  ;;  %v2928_v13 = vsel %vm364_vm0, %v2894_v53, %v431_v56  ;;  %v2948_v19 = vsel %vm367_vm2, %v2885_v50, %v455_v58  ;;  %956 = vmatprep.mubr.f32.mxu0 %v369_v32 }
  0x98   : > { %4415 = vst [vmem:[#allocation11_spill] sm:$0xff] %v2948_v19  ;;  %v2955_v21 = vsel %vm367_vm2, %v2881_v49, %v456_v60  ;;  %v2466_v30 = vpack.i.bf16 %v456_v60, %v455_v58  ;;  %v2461_v31 = vpack.i.bf16 %v2894_v53, %v2898_v54  ;;  %2521 = vset.pattern.permute.xlu0 %v2711_v33  ;;  %vm3011_vm5 = vcmp.eq.s32.totalorder %v4365_v36, 0 }
  0x99   : > { %2427 = vrot.lane.b32.xlu1 %v2426_v57, %s2709_s17  ;;  %4416 = vst [vmem:[#allocation12_spill] sm:$0xff] %v2955_v21  ;;  %v4364_v60 = vand.u32 15, %v2839_v15 }
  0x9a   : > { %2422 = vrot.lane.b32.xlu0 %v2421_v59, %s2709_s17  ;;  %2522 = vset.pattern.permute.xlu1 %v2711_v33 }
  0x9b   : > { %vm3042_vm6 = vcmp.eq.s32.totalorder %v4364_v60, 0 }
  0x9d   : > { %2437 = vrot.lane.b32.xlu1 %v2426_v57, %s2710_s18 }
  0x9e   : > { %2432 = vrot.lane.b32.xlu0 %v2421_v59, %s2710_s18 }
  0xa1   : > { %2447 = vrot.lane.b32.xlu1 %v2446_v25, %s2709_s17 }
  0xa2   : > { %2442 = vrot.lane.b32.xlu0 %v2441_v26, %s2709_s17 }
  0xa5   : > { %2457 = vrot.lane.b32.xlu1 %v2446_v25, %s2710_s18 }
  0xa6   : > { %2452 = vrot.lane.b32.xlu0 %v2441_v26, %s2710_s18 }
  0xa9   : > { %2467 = vrot.lane.b32.xlu1 %v2466_v30, %s2709_s17 }
  0xaa   : > { %2462 = vrot.lane.b32.xlu0 %v2461_v31, %s2709_s17 }
  0xad   : > { %2477 = vrot.lane.b32.xlu1 %v2466_v30, %s2710_s18 }
  0xae   : > { %2472 = vrot.lane.b32.xlu0 %v2461_v31, %s2710_s18 }
  0xb1   : > { %2487 = vrot.lane.b32.xlu1 %v2805_v5, %s2709_s17 }
  0xb2   : > { %2482 = vrot.lane.b32.xlu0 %v2794_v3, %s2709_s17 }
  0xb5   : > { %2497 = vrot.lane.b32.xlu1 %v2805_v5, %s2710_s18  ;;  %v381_v5 = vld [vmem:[%s4356_s2 + $0x8] sm:$0xff] }
  0xb6   : > { %2492 = vrot.lane.b32.xlu0 %v2794_v3, %s2710_s18  ;;  %v380_v3 = vld [vmem:[%s4356_s2] sm:$0xff] }
  0xb9   : > { %2507 = vrot.lane.b32.xlu1 %v2825_v10, %s2709_s17 }
  0xba   : > { %2502 = vrot.lane.b32.xlu0 %v2829_v11, %s2709_s17 }
  0xbd   : > { %2517 = vrot.lane.b32.xlu1 %v2825_v10, %s2710_s18  ;;  %v383_v10 = vld [vmem:[%s4356_s2 + $0x18] sm:$0xff] }
  0xbe   : > { %2512 = vrot.lane.b32.xlu0 %v2829_v11, %s2710_s18  ;;  %v382_v11 = vld [vmem:[%s4356_s2 + $0x10] sm:$0xff] }
  0xc1   : > { %866 = vperm.xlu1 %2522, %v381_v5  }
  0xc2   : > { %861 = vperm.xlu0 %2521, %v380_v3  }
  0xc5   : > { %871 = vperm.xlu1 %2522, %v382_v11  }
  0xc6   : > { %876 = vperm.xlu0 %2521, %v383_v10  }
 0x103   : > { %v2408_v34 = vpop.permute.xlu1 %2407 }
 0x104   : > { %v2403_v35 = vpop.permute.xlu0 %2402  ;;  %v2410_v39 = vunpack.i.h.bf16 %v2408_v34  ;;  %v2409_v43 = vunpack.i.l.bf16 %v2408_v34 }
 0x105   : > { %v2405_v37 = vunpack.i.h.bf16 %v2403_v35  ;;  %v2404_v38 = vunpack.i.l.bf16 %v2403_v35 }
 0x107   : > { %v2418_v44 = vpop.permute.xlu1 %2417  ;;  %v3017_v56 = vsel %vm473_vm3, %v2404_v38, %v2409_v43  ;;  %v3021_v57 = vsel %vm473_vm3, %v2405_v37, %v2410_v39  ;;  %v3056_v22 = vsel %vm473_vm3, %v2410_v39, %v2405_v37  ;;  %v3060_v23 = vsel %vm473_vm3, %v2409_v43, %v2404_v38 }
 0x108   : > { %v2413_v45 = vpop.permute.xlu0 %2412  ;;  %v2420_v46 = vunpack.i.h.bf16 %v2418_v44  ;;  %v2419_v47 = vunpack.i.l.bf16 %v2418_v44 }
 0x109   : > { %v2415_v51 = vunpack.i.h.bf16 %v2413_v45  ;;  %v2414_v52 = vunpack.i.l.bf16 %v2413_v45 }
 0x10b   : > { %v2428_v55 = vpop.permute.xlu1 %2427  ;;  %v3025_v58 = vsel %vm498_vm4, %v2419_v47, %v2414_v52  ;;  %v3029_v59 = vsel %vm498_vm4, %v2420_v46, %v2415_v51  ;;  %v3048_v45 = vsel %vm498_vm4, %v2415_v51, %v2420_v46 }
 0x10c   : > { %v2423_v25 = vpop.permute.xlu0 %2422  ;;  %v512_v26 = vsel %vm3011_vm5, %v3025_v58, %v3017_v56  ;;  %v514_v30 = vsel %vm3011_vm5, %v3029_v59, %v3021_v57  ;;  %v2430_v5 = vunpack.i.h.bf16 %v2428_v55  ;;  %v2429_v33 = vunpack.i.l.bf16 %v2428_v55 }
 0x10d   : > { %v2163_v31 = vpack.c.bf16 %v514_v30, %v512_v26  ;;  %v2425_v32 = vunpack.i.h.bf16 %v2423_v25  ;;  %v2424_v3 = vunpack.i.l.bf16 %v2423_v25  ;;  %v3052_v25 = vsel %vm498_vm4, %v2414_v52, %v2419_v47 }
 0x10e   : > { %v511_v38 = vsel %vm3042_vm6, %v3052_v25, %v3060_v23  ;;  %v513_v43 = vsel %vm3042_vm6, %v3048_v45, %v3056_v22 }
 0x10f   : > { %2164 = vmatprep.subr.bf16.mxu0 %v2163_v31  ;;  %v2438_v10 = vpop.permute.xlu1 %2437  ;;  %v3068_v46 = vsel %vm473_vm3, %v2429_v33, %v2424_v3 }
 0x110   : > { %v2433_v34 = vpop.permute.xlu0 %2432  ;;  %v2440_v35 = vunpack.i.h.bf16 %v2438_v10  ;;  %v2439_v44 = vunpack.i.l.bf16 %v2438_v10  ;;  %v3064_v10 = vsel %vm473_vm3, %v2430_v5, %v2425_v32 }
 0x111   : > { %v2435_v55 = vunpack.i.h.bf16 %v2433_v34  ;;  %v2434_v31 = vunpack.i.l.bf16 %v2433_v34 }
 0x113   : > { %v3072_v47 = vsel %vm498_vm4, %v2435_v55, %v2440_v35  ;;  %v3076_v37 = vsel %vm498_vm4, %v2434_v31, %v2439_v44  ;;  %v2448_v39 = vpop.permute.xlu1 %2447  ;;  %v3106_v40 = vsel %vm498_vm4, %v2439_v44, %v2434_v31  ;;  %v3110_v53 = vsel %vm498_vm4, %v2440_v35, %v2435_v55 }
 0x114   : > { %v2443_v51 = vpop.permute.xlu0 %2442  ;;  %v3090_v52 = vsel %vm3042_vm6, %v3076_v37, %v3068_v46  ;;  %v3096_v34 = vsel %vm3042_vm6, %v3072_v47, %v3064_v10  ;;  %v2450_v62 = vunpack.i.h.bf16 %v2448_v39  ;;  %4423 = vst [vmem:[#allocation15_spill] sm:$0xff] %v3106_v40  ;;  %v2449_v36 = vunpack.i.l.bf16 %v2448_v39  ;;  %4424 = vst [vmem:[#allocation16_spill] sm:$0xff] %v3110_v53 }
 0x115   : > { %4421 = vst [vmem:[#allocation13_spill] sm:$0xff] %v3090_v52  ;;  %4422 = vst [vmem:[#allocation14_spill] sm:$0xff] %v3096_v34  ;;  %v635_v18 = vsel %vm364_vm0, %v3090_v52, %v511_v38  ;;  %v637_v20 = vsel %vm364_vm0, %v3096_v34, %v513_v43  ;;  %v2445_v16 = vunpack.i.h.bf16 %v2443_v51  ;;  %v2444_v60 = vunpack.i.l.bf16 %v2443_v51 }
 0x116   : > { %v2165_v63 = vpack.c.bf16 %v637_v20, %v635_v18  ;;  %v3114_v43 = vsel %vm473_vm3, %v2424_v3, %v2429_v33  ;;  %v3118_v44 = vsel %vm473_vm3, %v2425_v32, %v2430_v5 }
 0x117   : > { %v2458_v54 = vpop.permute.xlu1 %2457  ;;  %4425 = vst [vmem:[#allocation17_spill] sm:$0xff] %v3114_v43  ;;  %4426 = vst [vmem:[#allocation18_spill] sm:$0xff] %v3118_v44  ;;  %v3122_v31 = vsel %vm473_vm3, %v2445_v16, %v2450_v62  ;;  %v626_v5 = vsel %vm3011_vm5, %v3110_v53, %v3118_v44 }
 0x118   : > { %v2453_v19 = vpop.permute.xlu0 %2452  ;;  %v2460_v38 = vunpack.i.h.bf16 %v2458_v54  ;;  %v2459_v21 = vunpack.i.l.bf16 %v2458_v54  ;;  %2166 = vmatpush1.bf16.msra.mxu0 %v2165_v63  ;;  %v624_v54 = vsel %vm3011_vm5, %v3106_v40, %v3114_v43  ;;  %v3130_v63 = vsel %vm473_vm3, %v2444_v60, %v2449_v36 }
 0x119   : > { %v2455_v18 = vunpack.i.h.bf16 %v2453_v19  ;;  %v2454_v20 = vunpack.i.l.bf16 %v2453_v19  ;;  %v3164_v51 = vsel %vm367_vm2, %v512_v26, %v624_v54  ;;  %v3168_v29 = vsel %vm367_vm2, %v514_v30, %v626_v5 }
 0x11a   : > { %4427 = vst [vmem:[#allocation19_spill] sm:$0xff] %v3164_v51  ;;  %4428 = vst [vmem:[#allocation20_spill] sm:$0xff] %v3168_v29  ;;  %v4436_v51 = vand.u32 15, %v2839_v15 }
 0x11b   : > { %v3134_v19 = vsel %vm498_vm4, %v2460_v38, %v2455_v18  ;;  %v3138_v32 = vsel %vm498_vm4, %v2459_v21, %v2454_v20  ;;  %v3140_v3 = vpop.permute.xlu1 %2467  ;;  %v3178_v14 = vsel %vm498_vm4, %v2455_v18, %v2460_v38  ;;  %v3186_v5 = vsel %vm498_vm4, %v2454_v20, %v2459_v21 }
 0x11c   : > { %v3146_v33 = vpop.permute.xlu0 %2462  ;;  %v3152_v35 = vsel %vm3011_vm5, %v3138_v32, %v3130_v63  ;;  %v3158_v55 = vsel %vm3011_vm5, %v3134_v19, %v3122_v31  ;;  %v4378_v53 = vunpack.i.h.bf16 %v3140_v3  ;;  %v3194_v38 = vsel %vm473_vm3, %v2450_v62, %v2445_v16 }
 0x11d   : > { %v2167_v39 = vpack.c.bf16 %v3158_v55, %v3152_v35  ;;  %v4377_v42 = vunpack.i.h.bf16 %v3146_v33  ;;  %v3198_v18 = vsel %vm473_vm3, %v2449_v36, %v2444_v60  ;;  %v4429_v20 = vunpack.i.l.bf16 %v3146_v33 }
 0x11e   : > { %vm3258_vm8 = vcmp.eq.s32.totalorder %v4436_v51, 15 }
 0x11f   : > { %2168 = vmatprep.subr.bf16.mxu0 %v2167_v39  ;;  %v3174_v40 = vpop.permute.xlu1 %2477  ;;  %v598_v21 = vsel %vm473_vm3, %v4378_v53, %v4377_v42  ;;  %v4430_v39 = vunpack.i.l.bf16 %v3140_v3 }
 0x120   : > { %v3180_v26 = vpop.permute.xlu0 %2472  ;;  %v4380_v30 = vunpack.i.h.bf16 %v3174_v40  ;;  %v4379_v54 = vunpack.i.l.bf16 %v3174_v40 }
 0x121   : > { %v4381_v44 = vunpack.i.h.bf16 %v3180_v26  ;;  %v597_v43 = vsel %vm473_vm3, %v4430_v39, %v4429_v20  ;;  %v4431_v16 = vunpack.i.l.bf16 %v3180_v26  ;;  %v515_v39 = vsel %vm3042_vm6, %v3186_v5, %v3198_v18 }
 0x122   : > { %v517_v20 = vsel %vm3042_vm6, %v3178_v14, %v3194_v38 }
 0x123   : > { %v618_v62 = vsel %vm498_vm4, %v4381_v44, %v4380_v30  ;;  %v617_v36 = vsel %vm498_vm4, %v4431_v16, %v4379_v54  ;;  %v3224_v60 = vpop.permute.xlu1 %2487  ;;  %v4433_v44 = vand.u32 15, %v2844_v24  ;;  %v391_v24 = vld [vmem:[%s4357_s3 + $0x38] sm:$0xff] }
 0x124   : > { %v3226_v42 = vpop.permute.xlu0 %2482  ;;  %v3238_v53 = vsel %vm3042_vm6, %v617_v36, %v597_v43  ;;  %v3242_v16 = vsel %vm3042_vm6, %v618_v62, %v598_v21 }
 0x125   : > { %4432 = vst [vmem:[#allocation21_spill] sm:$0xff] %v3238_v53  ;;  %v639_v54 = vsel %vm364_vm0, %v3238_v53, %v515_v39  ;;  %v641_v30 = vsel %vm364_vm0, %v3242_v16, %v517_v20  ;;  %vm3252_vm7 = vcmp.eq.s32.totalorder %v4433_v44, 15  ;;  %v4439_v53 = vpack.c.bf16 %v2852_v28, %v2848_v27 }
 0x126   : > { %v2169_v34 = vpack.c.bf16 %v641_v30, %v639_v54  ;;  %v3269_v44 = vsel %vm3252_vm7, %v3017_v56, %v3025_v58  ;;  %v3275_v51 = vsel %vm3252_vm7, %v3021_v57, %v3029_v59  ;;  %v3287_v27 = vsel %vm3258_vm8, %v3064_v10, %v3072_v47 }
 0x127   : > { %v2498_v52 = vpop.permute.xlu1 %2497  ;;  %4440 = vst [vmem:[#allocation22_spill] sm:$0xff] %v3287_v27  ;;  %v2485_v28 = vunpack.i.h.bf16 %v3226_v42  ;;  %v2490_v56 = vunpack.i.h.bf16 %v3224_v60  ;;  %v2489_v57 = vunpack.i.l.bf16 %v3224_v60  ;;  %v723_v10 = vsel %vm3258_vm8, %v3060_v23, %v3052_v25 }
 0x128   : > { %2170 = vmatpush1.bf16.msra.mxu0 %v2169_v34  ;;  %v2493_v39 = vpop.permute.xlu0 %2492  ;;  %v3281_v34 = vsel %vm3258_vm8, %v3068_v46, %v3076_v37  ;;  %v2500_v30 = vunpack.i.h.bf16 %v2498_v52  ;;  %v2499_v54 = vunpack.i.l.bf16 %v2498_v52  ;;  %v4441_v37 = vpack.c.bf16 %v2913_v61, %v2871_v41 }
 0x129   : > { %2172 = vmatprep.subr.bf16.mxu0 %v4439_v53  ;;  %v2484_v53 = vunpack.i.l.bf16 %v3226_v42  ;;  %v2495_v58 = vunpack.i.h.bf16 %v2493_v39  ;;  %v2494_v59 = vunpack.i.l.bf16 %v2493_v39  ;;  %v725_v42 = vsel %vm3258_vm8, %v3056_v22, %v3048_v45 }
 0x12a   : > { %v4442_v47 = vpack.c.bf16 %v2881_v49, %v2885_v50  ;;  %v2179_v52 = vpack.c.bf16 %v3275_v51, %v3269_v44  ;;  %v747_v41 = vsel %vm364_vm0, %v3281_v34, %v723_v10  ;;  %v749_v61 = vsel %vm364_vm0, %v3287_v27, %v725_v42 }
 0x12b   : > { %v2508_v46 = vpop.permute.xlu1 %2507  ;;  %v3319_v22 = vsel %vm3252_vm7, %v3130_v63, %v3138_v32  ;;  %v3325_v49 = vsel %vm3252_vm7, %v3122_v31, %v3134_v19  ;;  %v3329_v50 = vsel %vm3258_vm8, %v597_v43, %v617_v36  ;;  %v3333_v23 = vsel %vm3258_vm8, %v598_v21, %v618_v62 }
 0x12c   : > { %2174 = vmatpush1.bf16.msra.mxu0 %v4441_v37  ;;  %v2503_v20 = vpop.permute.xlu0 %2502  ;;  %v3337_v45 = vsel %vm473_vm3, %v2485_v28, %v2490_v56  ;;  %v3341_v25 = vsel %vm473_vm3, %v2484_v53, %v2489_v57  ;;  %v564_v31 = vsel %vm498_vm4, %v2500_v30, %v2495_v58  ;;  %v563_v63 = vsel %vm498_vm4, %v2499_v54, %v2494_v59 }
 0x12d   : > { %2176 = vmatprep.subr.bf16.mxu0 %v4442_v47  ;;  %v2505_v19 = vunpack.i.h.bf16 %v2503_v20  ;;  %v2504_v32 = vunpack.i.l.bf16 %v2503_v20  ;;  %v2510_v36 = vunpack.i.h.bf16 %v2508_v46  ;;  %v2509_v21 = vunpack.i.l.bf16 %v2508_v46 }
 0x12e   : > { %v4443_v62 = vpack.c.bf16 %v2928_v13, %v2923_v12  ;;  %v2181_v47 = vpack.c.bf16 %v749_v61, %v747_v41  ;;  %v2183_v27 = vpack.c.bf16 %v3325_v49, %v3319_v22  ;;  %v727_v20 = vsel %vm3258_vm8, %v3198_v18, %v3186_v5 }
 0x12f   : > { %v2518_v43 = vpop.permute.xlu1 %2517  ;;  %v729_v12 = vsel %vm3258_vm8, %v3194_v38, %v3178_v14  ;;  %v751_v13 = vsel %vm364_vm0, %v3329_v50, %v727_v20  ;;  %v570_v5 = vsel %vm3011_vm5, %v564_v31, %v3337_v45  ;;  %v540_v18 = vsel %vm473_vm3, %v2490_v56, %v2485_v28 }
 0x130   : > { %2178 = vmatpush1.bf16.msra.mxu0 %v4443_v62  ;;  %v2513_v60 = vpop.permute.xlu0 %2512  ;;  %v2520_v10 = vunpack.i.h.bf16 %v2518_v43  ;;  %v2519_v42 = vunpack.i.l.bf16 %v2518_v43  ;;  %v753_v46 = vsel %vm364_vm0, %v3333_v23, %v729_v12  ;;  %v539_v14 = vsel %vm473_vm3, %v2489_v57, %v2484_v53 }
 0x131   : > { %2180 = vmatprep.subr.bf16.mxu0 %v2179_v52  ;;  %v2515_v39 = vunpack.i.h.bf16 %v2513_v60  ;;  %v2514_v37 = vunpack.i.l.bf16 %v2513_v60  ;;  %v568_v52 = vsel %vm3011_vm5, %v563_v63, %v3341_v25  ;;  %v560_v38 = vsel %vm498_vm4, %v2495_v58, %v2500_v30 }
 0x132   : > { %v559_v41 = vsel %vm498_vm4, %v2494_v59, %v2499_v54  ;;  %v538_v61 = vsel %vm473_vm3, %v2505_v19, %v2510_v36  ;;  %v537_v43 = vsel %vm473_vm3, %v2504_v32, %v2509_v21  ;;  %v2185_v53 = vpack.c.bf16 %v753_v46, %v751_v13 }
 0x133   : > { %v566_v62 = vsel %vm498_vm4, %v2520_v10, %v2515_v39  ;;  %v565_v28 = vsel %vm498_vm4, %v2519_v42, %v2514_v37  ;;  %v2187_v56 = vpack.c.bf16 %v570_v5, %v568_v52  ;;  %v542_v57 = vsel %vm473_vm3, %v2510_v36, %v2505_v19 }
 0x134   : > { %2182 = vmatpush1.bf16.msra.mxu0 %v2181_v47  ;;  %v541_v58 = vsel %vm473_vm3, %v2509_v21, %v2504_v32  ;;  %v567_v59 = vsel %vm3042_vm6, %v559_v41, %v539_v14  ;;  %v569_v30 = vsel %vm3042_vm6, %v560_v38, %v540_v18  ;;  %v562_v54 = vsel %vm498_vm4, %v2515_v39, %v2520_v10 }
 0x135   : > { %2184 = vmatprep.subr.bf16.mxu0 %v2183_v27  ;;  %v561_v27 = vsel %vm498_vm4, %v2514_v37, %v2519_v42  ;;  %v572_v60 = vsel %vm3011_vm5, %v565_v28, %v537_v43  ;;  %v574_v19 = vsel %vm3011_vm5, %v566_v62, %v538_v61  ;;  %v2189_v32 = vpack.c.bf16 %v569_v30, %v567_v59 }
 0x136   : > { %v2191_v36 = vpack.c.bf16 %v574_v19, %v572_v60  ;;  %v571_v21 = vsel %vm3042_vm6, %v561_v27, %v541_v58  ;;  %v573_v47 = vsel %vm3042_vm6, %v562_v54, %v542_v57  ;;  %v2195_v39 = vpack.c.bf16 %v2797_v4, %v2790_v2  ;;  %v4458_v60 = vld [vmem:[#allocation10_spill] sm:$0xff] }
 0x137   : > { %v2193_v37 = vpack.c.bf16 %v573_v47, %v571_v21  ;;  %v2197_v10 = vpack.c.bf16 %v2787_v1, %v2784_v0  ;;  %v2199_v42 = vpack.c.bf16 %v2811_v7, %v2808_v6  ;;  %v2201_v20 = vpack.c.bf16 %v2817_v9, %v2814_v8  ;;  %v4463_v21 = vld [vmem:[#allocation16_spill] sm:$0xff]  ;;  %v4464_v47 = vld [vmem:[#allocation18_spill] sm:$0xff] }
 0x138   : > { %2186 = vmatpush1.bf16.msra.mxu0 %v2185_v53  ;;  %v732_v12 = vsel %vm3252_vm7, %v3341_v25, %v563_v63  ;;  %v734_v2 = vsel %vm3252_vm7, %v3337_v45, %v564_v31  ;;  %v731_v0 = vsel %vm3258_vm8, %v539_v14, %v559_v41  ;;  %v733_v1 = vsel %vm3258_vm8, %v540_v18, %v560_v38  ;;  %v4453_v53 = vld [vmem:[#allocation19_spill] sm:$0xff] }
 0x139   : > { %2188 = vmatprep.subr.bf16.mxu0 %v2187_v56  ;;  %v2203_v4 = vpack.c.bf16 %v734_v2, %v732_v12  ;;  %v736_v6 = vsel %vm3252_vm7, %v537_v43, %v565_v28  ;;  %v738_v7 = vsel %vm3252_vm7, %v538_v61, %v566_v62  ;;  %v4444_v8 = vunpack.i.h.bf16 %v3180_v26  ;;  %v4468_v12 = vld [vmem:[#allocation12_spill] sm:$0xff]  ;;  %v4469_v2 = vld [vmem:[#allocation11_spill] sm:$0xff] }
 0x13a   : > { %v4445_v9 = vunpack.i.h.bf16 %v3174_v40  ;;  %v4446_v25 = vunpack.i.l.bf16 %v3180_v26  ;;  %v4447_v31 = vunpack.i.l.bf16 %v3174_v40  ;;  %v2205_v13 = vpack.c.bf16 %v733_v1, %v731_v0 }
 0x13b   : > { %v2207_v46 = vpack.c.bf16 %v738_v7, %v736_v6  ;;  %v735_v52 = vsel %vm3258_vm8, %v541_v58, %v561_v27  ;;  %v737_v5 = vsel %vm3258_vm8, %v542_v57, %v562_v54  ;;  %v4448_v18 = vunpack.i.h.bf16 %v3140_v3  ;;  %v4455_v57 = vld [vmem:[#allocation13_spill] sm:$0xff]  ;;  %v4456_v58 = vld [vmem:[#allocation14_spill] sm:$0xff]  ;;  %v4471_v7 = vld [vmem:[#allocation7_spill] sm:$0xff] }
 0x13c   : > { %2190 = vmatpush1.bf16.msra.mxu0 %v2189_v32  ;;  %v622_v45 = vsel %vm498_vm4, %v4445_v9, %v4444_v8  ;;  %v621_v63 = vsel %vm498_vm4, %v4447_v31, %v4446_v25  ;;  %v4449_v14 = vunpack.i.h.bf16 %v3146_v33  ;;  %v4450_v40 = vunpack.i.l.bf16 %v3140_v3  ;;  %v4457_v54 = vld [vmem:[#allocation21_spill] sm:$0xff]  ;;  %v4461_v32 = vld [vmem:[#allocation15_spill] sm:$0xff]  ;;  %v4472_v8 = vld [vmem:[#allocation8_spill] sm:$0xff] }
 0x13d   : > { %2192 = vmatprep.subr.bf16.mxu0 %v2191_v36  ;;  %v4451_v38 = vunpack.i.l.bf16 %v3146_v33  ;;  %v2209_v62 = vpack.c.bf16 %v737_v5, %v735_v52  ;;  %v4452_v33 = vld [vmem:[#allocation20_spill] sm:$0xff]  ;;  %v2213_v59 = vpack.c.bf16 %v4456_v58, %v4455_v57  ;;  %v2217_v27 = vpack.c.bf16 %v3242_v16, %v4457_v54  ;;  %v4474_v31 = vld [vmem:[#allocation22_spill] sm:$0xff]  ;;  %v378_v52 = vld [vmem:[%s4355_s1 + $0x50] sm:$0xff] }
 0x13e   : > { %v594_v26 = vsel %vm473_vm3, %v4449_v14, %v4448_v18  ;;  %v4454_v56 = vpack.c.bf16 %v4452_v33, %v4453_v53  ;;  %v4473_v9 = vpack.c.bf16 %v4471_v7, %v4472_v8  ;;  %v377_v5 = vld [vmem:[%s4355_s1 + $0x48] sm:$0xff]  ;;  %v4389_v18 = vmov 0.0   ;;  %v376_v14 = vld [vmem:[%s4355_s1 + $0x40] sm:$0xff] }
 0x13f   : > { %v593_v41 = vsel %vm473_vm3, %v4451_v38, %v4450_v40  ;;  %v630_v43 = vsel %vm3011_vm5, %v622_v45, %v594_v26  ;;  %v746_v1 = vsel %vm3252_vm7, %v594_v26, %v622_v45  ;;  %v372_v45 = vld [vmem:[%s4355_s1 + $0x20] sm:$0xff]  ;;  %v379_v26 = vld [vmem:[%s4355_s1 + $0x58] sm:$0xff] }
 0x140   : > { %2194 = vmatpush1.bf16.msra.mxu0 %v2193_v37  ;;  %v628_v61 = vsel %vm3011_vm5, %v621_v63, %v593_v41  ;;  %v654_v3 = vsel %vm367_vm2, %v3158_v55, %v630_v43  ;;  %v4462_v55 = vld [vmem:[#allocation17_spill] sm:$0xff]  ;;  %v4465_v37 = vld [vmem:[#allocation6_spill] sm:$0xff]  ;;  %v744_v0 = vsel %vm3252_vm7, %v593_v41, %v621_v63  ;;  %v762_v25 = vsel %vm367_vm2, %v3325_v49, %v746_v1  ;;  %v375_v49 = vld [vmem:[%s4355_s1 + $0x38] sm:$0xff]  ;;  %v867_v43 = vpop.permute.xlu1 %866 }
 0x141   : > { %2196 = vmatprep.subr.bf16.mxu0 %v2195_v39  ;;  %v652_v28 = vsel %vm367_vm2, %v3152_v35, %v628_v61  ;;  %v4459_v35 = vld [vmem:[#allocation9_spill] sm:$0xff]  ;;  %v740_v36 = vsel %vm3252_vm7, %v4462_v55, %v4461_v32  ;;  %v742_v39 = vsel %vm3252_vm7, %v4464_v47, %v4463_v21  ;;  %v2229_v63 = vpack.c.bf16 %v4474_v31, %v3281_v34  ;;  %v374_v34 = vld [vmem:[%s4355_s1 + $0x30] sm:$0xff]  ;;  %v862_v40 = vpop.permute.xlu0 %861 }
 0x142   : > { %v2215_v30 = vpack.c.bf16 %v654_v3, %v652_v28  ;;  %v4460_v19 = vpack.c.bf16 %v4458_v60, %v4459_v35  ;;  %v756_v16 = vsel %vm367_vm2, %v3269_v44, %v740_v36  ;;  %v368_v44 = vld [vmem:[%s4355_s1] sm:$0xff] }
 0x144   : > { %2198 = vmatpush1.bf16.msra.mxu0 %v2197_v10  ;;  %v4466_v10 = vld [vmem:[#allocation5_spill] sm:$0xff] }
 0x145   : > { %2200 = vmatprep.subr.bf16.mxu0 %v2199_v42  ;;  %v4467_v42 = vpack.c.bf16 %v4465_v37, %v4466_v10 }
 0x148   : > { %2202 = vmatpush1.bf16.msra.mxu0 %v2201_v20  ;;  %v758_v20 = vsel %vm367_vm2, %v3275_v51, %v742_v39  ;;  %v760_v51 = vsel %vm367_vm2, %v3319_v22, %v744_v0  ;;  %v371_v22 = vld [vmem:[%s4355_s1 + $0x18] sm:$0xff]  ;;  %v877_v39 = vpop.permute.xlu0 %876 }
 0x149   : > { %2204 = vmatprep.subr.bf16.mxu0 %v2203_v4  ;;  %v4470_v4 = vpack.c.bf16 %v4468_v12, %v4469_v2  ;;  %v2227_v6 = vpack.c.bf16 %v758_v20, %v756_v16 }
 0x14c   : > { %2206 = vmatpush1.bf16.msra.mxu0 %v2205_v13  ;;  %v2231_v13 = vpack.c.bf16 %v762_v25, %v760_v51 }
 0x14d   : > { %2208 = vmatprep.subr.bf16.mxu0 %v2207_v46  ;;  %v2233_v46 = vpack.c.bf16 %v3333_v23, %v3329_v50  ;;  %v370_v50 = vld [vmem:[%s4355_s1 + $0x10] sm:$0xff]  ;;  %v373_v23 = vld [vmem:[%s4355_s1 + $0x28] sm:$0xff] }
 0x150   : > { %2210 = vmatpush1.bf16.msra.mxu0 %v2209_v62 }
 0x151   : > { %2212 = vmatprep.subr.bf16.mxu0 %v4454_v56 }
 0x154   : > { %2214 = vmatpush1.bf16.msra.mxu0 %v2213_v59  ;;  %v872_v59 = vpop.permute.xlu1 %871 }
 0x155   : > { %2216 = vmatprep.subr.bf16.mxu0 %v2215_v30 }
 0x158   : > { %2218 = vmatpush1.bf16.msra.mxu0 %v2217_v27 }
 0x159   : > { %2220 = vmatprep.subr.bf16.mxu0 %v4460_v19 }
 0x15c   : > { %2222 = vmatpush1.bf16.msra.mxu0 %v4467_v42 }
 0x15d   : > { %2224 = vmatprep.subr.bf16.mxu0 %v4470_v4 }
 0x160   : > { %2226 = vmatpush1.bf16.msra.mxu0 %v4473_v9 }
 0x161   : > { %2228 = vmatprep.subr.bf16.mxu0 %v2227_v6 }
 0x163   : > { %957 = vmatmul.mubr.f32.vlgmr.msra.gmra.mrb[0].mxu0 %v368_v44 }
 0x164   : > { %2230 = vmatpush1.bf16.msra.mxu0 %v2229_v63  ;;  %962 = vmatprep.mubr.f32.mxu0 %v372_v45 }
 0x165   : > { %2232 = vmatprep.subr.bf16.mxu0 %v2231_v13 }
 0x167   : > { %963 = vmatmul.mubr.f32.gmra.mrb[2].mxu0 %v371_v22 }
 0x168   : > { %2234 = vmatpush1.bf16.msra.mxu0 %v2233_v46  ;;  %968 = vmatprep.mubr.f32.mxu0 %v375_v49 }
 0x16b   : > { %969 = vmatmul.mubr.f32.gmra.mrb[4].mxu0 %v374_v34 }
 0x16c   : > { %974 = vmatprep.mubr.f32.mxu0 %v378_v52 }
 0x16f   : > { %975 = vmatmul.mubr.f32.gmra.mrb[6].mxu0 %v377_v5 }
 0x170   : > { %1045 = vmatprep.mubr.f32.mxu0 %v4389_v18 }
 0x173   : > { %2112 = vmatmul.mubr.msk.f32.vlgmr.msra.gmra.mrb[0].mxu0 %vm879_vm9, %v370_v50 }
 0x174   : > { %1051 = vmatprep.mubr.f32.mxu0 %v4389_v18 }
 0x177   : > { %2113 = vmatmul.mubr.msk.f32.gmra.mrb[2].mxu0 %vm879_vm9, %v373_v23 }
 0x178   : > { %1057 = vmatprep.mubr.f32.mxu0 %v4389_v18 }
 0x17b   : > { %2114 = vmatmul.mubr.msk.f32.gmra.mrb[4].mxu0 %vm879_vm9, %v376_v14 }
 0x17c   : > { %1063 = vmatprep.mubr.f32.mxu0 %v4389_v18 }
 0x17f   : > { %2115 = vmatmul.mubr.msk.f32.gmra.mrb[6].mxu0 %vm879_vm9, %v379_v26 }
 0x246   : > { %v1047_v38 = vpop.f32.mrb[0].mxu0 }
 0x247   : > { %v2313_v41 = vadd.f32 %v1047_v38, %v862_v40  ;;  %v1049_v61 = vpop.f32.mrb[1].mxu0 }
 0x248   : > { %v2314_v62 = vadd.f32 %v1049_v61, %v862_v40 }
 0x249   : > { %v1078_v3 = vmul.f32 0.01, %v2313_v41  ;;  %vm1070_vm10 = vcmp.ge.f32.partialorder %v2313_v41, 0.0 }
 0x24a   : > { %v1053_v28 = vpop.f32.mrb[2].mxu0  ;;  %v1079_v33 = vmul.f32 0.01, %v2314_v62  ;;  %vm1071_vm11 = vcmp.ge.f32.partialorder %v2314_v62, 0.0 }
 0x24b   : > { %v2315_v53 = vadd.f32 %v1053_v28, %v867_v43  ;;  %v1055_v56 = vpop.f32.mrb[3].mxu0  ;;  %v3556_v27 = vsel %vm1070_vm10, %v2313_v41, %v1078_v3 }
 0x24c   : > { %v2316_v57 = vadd.f32 %v1055_v56, %v867_v43  ;;  %v3558_v60 = vsel %vm1071_vm11, %v2314_v62, %v1079_v33 }
 0x24d   : > { %vm1072_vm12 = vcmp.ge.f32.partialorder %v2315_v53, 0.0  ;;  %v1080_v58 = vmul.f32 0.01, %v2315_v53 }
 0x24e   : > { %vm1073_vm13 = vcmp.ge.f32.partialorder %v2316_v57, 0.0  ;;  %v1081_v30 = vmul.f32 0.01, %v2316_v57  ;;  %v1059_v54 = vpop.f32.mrb[4].mxu0 }
 0x24f   : > { %v3560_v35 = vsel %vm1072_vm12, %v2315_v53, %v1080_v58  ;;  %v2317_v19 = vadd.f32 %v1059_v54, %v872_v59  ;;  %v1061_v32 = vpop.f32.mrb[5].mxu0 }
 0x250   : > { %v3562_v55 = vsel %vm1073_vm13, %v2316_v57, %v1081_v30  ;;  %v2318_v36 = vadd.f32 %v1061_v32, %v872_v59  ;;  %v3566_v21 = vpack.i.bf16 %v3560_v35, %v3556_v27 }
 0x251   : > { %v3570_v47 = vpack.i.bf16 %v3562_v55, %v3558_v60  ;;  %vm1074_vm14 = vcmp.ge.f32.partialorder %v2317_v19, 0.0  ;;  %v1082_v37 = vmul.f32 0.01, %v2317_v19 }
 0x252   : > { %v1065_v10 = vpop.f32.mrb[6].mxu0  ;;  %2524 = vrot.lane.b32.xlu1 %v3566_v21, %s2708_s16  ;;  %v1083_v42 = vmul.f32 0.01, %v2318_v36  ;;  %vm1075_vm15 = vcmp.ge.f32.partialorder %v2318_v36, 0.0 }
 0x253   : > { %v2319_v16 = vadd.f32 %v1065_v10, %v877_v39  ;;  %v1067_v20 = vpop.f32.mrb[7].mxu0  ;;  %2534 = vrot.lane.b32.xlu0 %v3570_v47, %s2708_s16  ;;  %v3583_v6 = vsel %vm1074_vm14, %v2317_v19, %v1082_v37 }
 0x254   : > { %v2320_v12 = vadd.f32 %v1067_v20, %v877_v39  ;;  %v3585_v7 = vsel %vm1075_vm15, %v2318_v36, %v1083_v42 }
 0x255   : > { %vm1076_vm10 = vcmp.ge.f32.partialorder %v2319_v16, 0.0  ;;  %v1084_v0 = vmul.f32 0.01, %v2319_v16 }
 0x256   : > { %vm1077_vm11 = vcmp.ge.f32.partialorder %v2320_v12, 0.0  ;;  %v1085_v1 = vmul.f32 0.01, %v2320_v12  ;;  %2529 = vrot.lane.b32.xlu1 %v3566_v21, %s2707_s15 }
 0x257   : > { %v3587_v8 = vsel %vm1076_vm10, %v2319_v16, %v1084_v0  ;;  %2539 = vrot.lane.b32.xlu0 %v3570_v47, %s2707_s15 }
 0x258   : > { %v3591_v9 = vsel %vm1077_vm11, %v2320_v12, %v1085_v1  ;;  %v3595_v44 = vpack.i.bf16 %v3587_v8, %v3583_v6 }
 0x259   : > { %v3599_v51 = vpack.i.bf16 %v3591_v9, %v3585_v7  ;;  %v4505_v11 = vpack.c.bf16 %v3591_v9, %v3585_v7 }
 0x25a   : > { %2544 = vrot.lane.b32.xlu1 %v3595_v44, %s2708_s16 }
 0x25b   : > { %2554 = vrot.lane.b32.xlu0 %v3599_v51, %s2708_s16 }
 0x25e   : > { %2549 = vrot.lane.b32.xlu1 %v3595_v44, %s2707_s15 }
 0x25f   : > { %2559 = vrot.lane.b32.xlu0 %v3599_v51, %s2707_s15 }
 0x2c4   : > { %v2525_v31 = vpop.permute.xlu1 %2524 }
 0x2c5   : > { %v2527_v63 = vunpack.i.h.bf16 %v2525_v31  ;;  %v2526_v13 = vunpack.i.l.bf16 %v2525_v31  ;;  %v2535_v22 = vpop.permute.xlu0 %2534 }
 0x2c6   : > { %v2537_v49 = vunpack.i.h.bf16 %v2535_v22  ;;  %v2536_v46 = vunpack.i.l.bf16 %v2535_v22 }
 0x2c8   : > { %v3615_v34 = vsel %vm364_vm0, %v2526_v13, %v2536_v46  ;;  %v3619_v52 = vsel %vm364_vm0, %v2527_v63, %v2537_v49  ;;  %v2530_v5 = vpop.permute.xlu1 %2529  ;;  %v1130_v50 = vsel %vm364_vm0, %v2536_v46, %v2526_v13  ;;  %v1131_v23 = vsel %vm364_vm0, %v2537_v49, %v2527_v63 }
 0x2c9   : > { %v2532_v14 = vunpack.i.h.bf16 %v2530_v5  ;;  %v2531_v26 = vunpack.i.l.bf16 %v2530_v5  ;;  %v2540_v40 = vpop.permute.xlu0 %2539  ;;  %v2563_v38 = vpack.i.bf16 %v1131_v23, %v1130_v50  ;;  %v2568_v41 = vpack.i.bf16 %v3619_v52, %v3615_v34 }
 0x2ca   : > { %v2542_v61 = vunpack.i.h.bf16 %v2540_v40  ;;  %v2541_v43 = vunpack.i.l.bf16 %v2540_v40 }
 0x2cb   : > { %2564 = vrot.lane.b32.xlu1 %v2563_v38, %s2709_s17  ;;  %2569 = vrot.lane.b32.xlu0 %v2568_v41, %s2709_s17 }
 0x2cc   : > { %v3633_v28 = vsel %vm448_vm1, %v2531_v26, %v2541_v43  ;;  %v3637_v3 = vsel %vm448_vm1, %v2532_v14, %v2542_v61  ;;  %v2545_v33 = vpop.permute.xlu1 %2544  ;;  %v1154_v53 = vsel %vm448_vm1, %v2541_v43, %v2531_v26  ;;  %v1155_v54 = vsel %vm448_vm1, %v2542_v61, %v2532_v14 }
 0x2cd   : > { %4475 = vst [vmem:[#allocation20_spill] sm:$0xff] %v3633_v28  ;;  %4476 = vst [vmem:[#allocation19_spill] sm:$0xff] %v3637_v3  ;;  %v2547_v56 = vunpack.i.h.bf16 %v2545_v33  ;;  %v2546_v57 = vunpack.i.l.bf16 %v2545_v33  ;;  %v2555_v58 = vpop.permute.xlu0 %2554  ;;  %v3648_v19 = vsel %vm364_vm0, %v3633_v28, %v1130_v50  ;;  %v3653_v32 = vsel %vm364_vm0, %v3637_v3, %v1131_v23 }
 0x2ce   : > { %v2557_v59 = vunpack.i.h.bf16 %v2555_v58  ;;  %v2556_v30 = vunpack.i.l.bf16 %v2555_v58  ;;  %v3658_v36 = vsel %vm367_vm2, %v3615_v34, %v1154_v53  ;;  %v2583_v12 = vpack.i.bf16 %v3637_v3, %v3633_v28 }
 0x2cf   : > { %2574 = vrot.lane.b32.xlu1 %v2563_v38, %s2710_s18  ;;  %2579 = vrot.lane.b32.xlu0 %v2568_v41, %s2710_s18  ;;  %4477 = vst [vmem:[#allocation13_spill] sm:$0xff] %v3658_v36  ;;  %v2588_v0 = vpack.i.bf16 %v1155_v54, %v1154_v53  ;;  %v3679_v22 = vsel %vm367_vm2, %v3619_v52, %v1155_v54  ;;  %v396_v54 = vld [vmem:[%s4358_s4] sm:$0xff] }
 0x2d0   : > { %v3662_v39 = vsel %vm364_vm0, %v2546_v57, %v2556_v30  ;;  %v3666_v37 = vsel %vm364_vm0, %v2547_v56, %v2557_v59  ;;  %v2550_v10 = vpop.permute.xlu1 %2549  ;;  %4478 = vst [vmem:[#allocation14_spill] sm:$0xff] %v3679_v22  ;;  %v1132_v23 = vsel %vm364_vm0, %v2556_v30, %v2546_v57  ;;  %v1133_v14 = vsel %vm364_vm0, %v2557_v59, %v2547_v56 }
 0x2d1   : > { %v2552_v42 = vunpack.i.h.bf16 %v2550_v10  ;;  %v2551_v16 = vunpack.i.l.bf16 %v2550_v10  ;;  %v2560_v20 = vpop.permute.xlu0 %2559  ;;  %v2603_v57 = vpack.i.bf16 %v1133_v14, %v1132_v23  ;;  %v2608_v58 = vpack.i.bf16 %v3666_v37, %v3662_v39 }
 0x2d2   : > { %v2562_v1 = vunpack.i.h.bf16 %v2560_v20  ;;  %v2561_v31 = vunpack.i.l.bf16 %v2560_v20 }
 0x2d3   : > { %2584 = vrot.lane.b32.xlu1 %v2583_v12, %s2709_s17  ;;  %2589 = vrot.lane.b32.xlu0 %v2588_v0, %s2709_s17 }
 0x2d4   : > { %v3683_v49 = vsel %vm448_vm1, %v2551_v16, %v2561_v31  ;;  %v3687_v46 = vsel %vm448_vm1, %v2552_v42, %v2562_v1  ;;  %v1156_v5 = vsel %vm448_vm1, %v2561_v31, %v2551_v16  ;;  %v1157_v50 = vsel %vm448_vm1, %v2562_v1, %v2552_v42 }
 0x2d5   : > { %4479 = vst [vmem:[#allocation21_spill] sm:$0xff] %v3683_v49  ;;  %4480 = vst [vmem:[#allocation10_spill] sm:$0xff] %v3687_v46  ;;  %v3700_v26 = vsel %vm364_vm0, %v3683_v49, %v1132_v23  ;;  %v3705_v40 = vsel %vm364_vm0, %v3687_v46, %v1133_v14  ;;  %v3718_v43 = vsel %vm367_vm2, %v3662_v39, %v1156_v5  ;;  %vm1870_vm1 = vcmask 15360  }
 0x2d6   : > { %4481 = vst [vmem:[#allocation9_spill] sm:$0xff] %v3718_v43  ;;  %v3723_v33 = vsel %vm367_vm2, %v3666_v37, %v1157_v50  ;;  %v2623_v59 = vpack.i.bf16 %v3687_v46, %v3683_v49  ;;  %v2628_v30 = vpack.i.bf16 %v1157_v50, %v1156_v5 }
 0x2d7   : > { %2594 = vrot.lane.b32.xlu1 %v2583_v12, %s2710_s18  ;;  %2599 = vrot.lane.b32.xlu0 %v2588_v0, %s2710_s18  ;;  %4482 = vst [vmem:[#allocation15_spill] sm:$0xff] %v3723_v33 }
 0x2db   : > { %2604 = vrot.lane.b32.xlu1 %v2603_v57, %s2709_s17  ;;  %2609 = vrot.lane.b32.xlu0 %v2608_v58, %s2709_s17 }
 0x2df   : > { %2614 = vrot.lane.b32.xlu1 %v2603_v57, %s2710_s18  ;;  %2619 = vrot.lane.b32.xlu0 %v2608_v58, %s2710_s18 }
 0x2e3   : > { %2624 = vrot.lane.b32.xlu1 %v2623_v59, %s2709_s17  ;;  %2629 = vrot.lane.b32.xlu0 %v2628_v30, %s2709_s17 }
 0x2e7   : > { %2634 = vrot.lane.b32.xlu1 %v2623_v59, %s2710_s18  ;;  %2639 = vrot.lane.b32.xlu0 %v2628_v30, %s2710_s18 }
 0x2eb   : > { %2644 = vrot.lane.b32.xlu1 %v3566_v21, %s2709_s17  ;;  %2649 = vrot.lane.b32.xlu0 %v3570_v47, %s2709_s17 }
 0x2ef   : > { %2654 = vrot.lane.b32.xlu1 %v3566_v21, %s2710_s18  ;;  %2659 = vrot.lane.b32.xlu0 %v3570_v47, %s2710_s18  ;;  %v397_v21 = vld [vmem:[%s4358_s4 + $0x8] sm:$0xff]  ;;  %v398_v47 = vld [vmem:[%s4358_s4 + $0x10] sm:$0xff] }
 0x2f3   : > { %2664 = vrot.lane.b32.xlu1 %v3595_v44, %s2709_s17  ;;  %2669 = vrot.lane.b32.xlu0 %v3599_v51, %s2709_s17 }
 0x2f7   : > { %2674 = vrot.lane.b32.xlu1 %v3595_v44, %s2710_s18  ;;  %2679 = vrot.lane.b32.xlu0 %v3599_v51, %s2710_s18  ;;  %v399_v44 = vld [vmem:[%s4358_s4 + $0x18] sm:$0xff]  ;;  %v385_v51 = vld [vmem:[%s4357_s3 + $0x8] sm:$0xff] }
 0x2f8   : > { %1638 = vmatprep.mubr.f32.mxu1 %v385_v51 }
 0x2fb   : > { %1544 = vperm.xlu1 %2522, %v396_v54   ;;  %1549 = vperm.xlu0 %2521, %v397_v21  }
 0x2ff   : > { %1554 = vperm.xlu1 %2522, %v398_v47   ;;  %1559 = vperm.xlu0 %2521, %v399_v44  }
 0x33d   : > { %v2565_v10 = vpop.permute.xlu1 %2564  ;;  %v2570_v42 = vpop.permute.xlu0 %2569 }
 0x33e   : > { %v2567_v16 = vunpack.i.h.bf16 %v2565_v10  ;;  %v2566_v20 = vunpack.i.l.bf16 %v2565_v10  ;;  %v2572_v12 = vunpack.i.h.bf16 %v2570_v42  ;;  %v2571_v0 = vunpack.i.l.bf16 %v2570_v42 }
 0x340   : > { %v3774_v57 = vsel %vm473_vm3, %v2566_v20, %v2571_v0  ;;  %v3778_v58 = vsel %vm473_vm3, %v2567_v16, %v2572_v12 }
 0x341   : > { %v2575_v1 = vpop.permute.xlu1 %2574  ;;  %v2580_v31 = vpop.permute.xlu0 %2579 }
 0x342   : > { %v2577_v5 = vunpack.i.h.bf16 %v2575_v1  ;;  %v2576_v50 = vunpack.i.l.bf16 %v2575_v1  ;;  %v2582_v23 = vunpack.i.h.bf16 %v2580_v31  ;;  %v2581_v14 = vunpack.i.l.bf16 %v2580_v31 }
 0x344   : > { %v3782_v59 = vsel %vm498_vm4, %v2581_v14, %v2576_v50  ;;  %v3786_v30 = vsel %vm498_vm4, %v2582_v23, %v2577_v5  ;;  %v3798_v25 = vsel %vm498_vm4, %v2577_v5, %v2582_v23  ;;  %v3802_v4 = vsel %vm498_vm4, %v2576_v50, %v2581_v14 }
 0x345   : > { %v2585_v54 = vpop.permute.xlu1 %2584  ;;  %v2590_v21 = vpop.permute.xlu0 %2589  ;;  %v1207_v47 = vsel %vm3011_vm5, %v3782_v59, %v3774_v57  ;;  %v1209_v44 = vsel %vm3011_vm5, %v3786_v30, %v3778_v58  ;;  %v3822_v5 = vsel %vm473_vm3, %v2572_v12, %v2567_v16  ;;  %v3826_v50 = vsel %vm473_vm3, %v2571_v0, %v2566_v20 }
 0x346   : > { %v2235_v51 = vpack.c.bf16 %v1209_v44, %v1207_v47  ;;  %v2587_v10 = vunpack.i.h.bf16 %v2585_v54  ;;  %v2586_v42 = vunpack.i.l.bf16 %v2585_v54  ;;  %v2592_v1 = vunpack.i.h.bf16 %v2590_v21 }
 0x347   : > { %v2591_v31 = vunpack.i.l.bf16 %v2590_v21  ;;  %v1206_v16 = vsel %vm3042_vm6, %v3802_v4, %v3826_v50  ;;  %v1208_v20 = vsel %vm3042_vm6, %v3798_v25, %v3822_v5 }
 0x348   : > { %2236 = vmatprep.subr.bf16.mxu1 %v2235_v51  ;;  %v3806_v54 = vsel %vm473_vm3, %v2592_v1, %v2587_v10 }
 0x349   : > { %v2595_v18 = vpop.permute.xlu1 %2594  ;;  %v2600_v56 = vpop.permute.xlu0 %2599  ;;  %v3810_v21 = vsel %vm473_vm3, %v2591_v31, %v2586_v42 }
 0x34a   : > { %v2597_v53 = vunpack.i.h.bf16 %v2595_v18  ;;  %v2596_v41 = vunpack.i.l.bf16 %v2595_v18  ;;  %v2602_v38 = vunpack.i.h.bf16 %v2600_v56  ;;  %v2601_v45 = vunpack.i.l.bf16 %v2600_v56 }
 0x34c   : > { %v3814_v18 = vsel %vm498_vm4, %v2597_v53, %v2602_v38  ;;  %v3818_v56 = vsel %vm498_vm4, %v2596_v41, %v2601_v45  ;;  %v3850_v12 = vsel %vm498_vm4, %v2602_v38, %v2597_v53  ;;  %v3854_v0 = vsel %vm498_vm4, %v2601_v45, %v2596_v41 }
 0x34d   : > { %v2605_v23 = vpop.permute.xlu1 %2604  ;;  %v2610_v14 = vpop.permute.xlu0 %2609  ;;  %v3832_v51 = vsel %vm3042_vm6, %v3818_v56, %v3810_v21  ;;  %v3838_v2 = vsel %vm3042_vm6, %v3814_v18, %v3806_v54  ;;  %4485 = vst [vmem:[#allocation18_spill] sm:$0xff] %v3850_v12  ;;  %4486 = vst [vmem:[#allocation6_spill] sm:$0xff] %v3854_v0  ;;  %v3864_v38 = vsel %vm473_vm3, %v2587_v10, %v2592_v1 }
 0x34e   : > { %4483 = vst [vmem:[#allocation17_spill] sm:$0xff] %v3832_v51  ;;  %4484 = vst [vmem:[#allocation16_spill] sm:$0xff] %v3838_v2  ;;  %v1326_v61 = vsel %vm364_vm0, %v3832_v51, %v1206_v16  ;;  %v1328_v13 = vsel %vm364_vm0, %v3838_v2, %v1208_v20  ;;  %v2607_v63 = vunpack.i.h.bf16 %v2605_v23  ;;  %v2606_v62 = vunpack.i.l.bf16 %v2605_v23 }
 0x34f   : > { %v2612_v49 = vunpack.i.h.bf16 %v2610_v14  ;;  %v2611_v46 = vunpack.i.l.bf16 %v2610_v14  ;;  %4487 = vst [vmem:[#allocation5_spill] sm:$0xff] %v3864_v38  ;;  %v3868_v45 = vsel %vm473_vm3, %v2586_v42, %v2591_v31  ;;  %v2237_v43 = vpack.c.bf16 %v1328_v13, %v1326_v61 }
 0x350   : > { %4488 = vst [vmem:[#allocation12_spill] sm:$0xff] %v3868_v45  ;;  %v1319_v23 = vsel %vm3011_vm5, %v3854_v0, %v3868_v45  ;;  %v1321_v10 = vsel %vm3011_vm5, %v3850_v12, %v3864_v38 }
 0x351   : > { %v2615_v41 = vpop.permute.xlu1 %2614  ;;  %v2620_v53 = vpop.permute.xlu0 %2619  ;;  %2238 = vmatpush1.bf16.msra.mxu1 %v2237_v43  ;;  %v1177_v42 = vsel %vm473_vm3, %v2607_v63, %v2612_v49  ;;  %v1176_v13 = vsel %vm473_vm3, %v2606_v62, %v2611_v46 }
 0x352   : > { %v2617_v16 = vunpack.i.h.bf16 %v2615_v41  ;;  %v2616_v33 = vunpack.i.l.bf16 %v2615_v41  ;;  %v2622_v28 = vunpack.i.h.bf16 %v2620_v53  ;;  %v2621_v3 = vunpack.i.l.bf16 %v2620_v53 }
 0x353   : > { %v3900_v41 = vsel %vm367_vm2, %v1207_v47, %v1319_v23  ;;  %v3904_v53 = vsel %vm367_vm2, %v1209_v44, %v1321_v10 }
 0x354   : > { %v1205_v61 = vsel %vm498_vm4, %v2622_v28, %v2617_v16  ;;  %v1204_v43 = vsel %vm498_vm4, %v2621_v3, %v2616_v33  ;;  %4490 = vst [vmem:[#allocation7_spill] sm:$0xff] %v3900_v41  ;;  %4491 = vst [vmem:[#allocation8_spill] sm:$0xff] %v3904_v53  ;;  %v3924_v0 = vsel %vm498_vm4, %v2617_v16, %v2622_v28 }
 0x355   : > { %v3886_v1 = vpop.permute.xlu1 %2624  ;;  %v3888_v31 = vpop.permute.xlu0 %2629  ;;  %v3892_v14 = vsel %vm3011_vm5, %v1204_v43, %v1176_v13  ;;  %v3896_v20 = vsel %vm3011_vm5, %v1205_v61, %v1177_v42  ;;  %v3983_v53 = vsel %vm3258_vm8, %v3810_v21, %v3818_v56  ;;  %v4002_v21 = vsel %vm3252_vm7, %v3774_v57, %v3782_v59 }
 0x356   : > { %4489 = vst [vmem:[#allocation11_spill] sm:$0xff] %v3896_v20  ;;  %v2239_v38 = vpack.c.bf16 %v3896_v20, %v3892_v14  ;;  %v4492_v36 = vunpack.i.h.bf16 %v3886_v1  ;;  %v4493_v2 = vunpack.i.h.bf16 %v3888_v31  ;;  %v4494_v10 = vunpack.i.l.bf16 %v3886_v1 }
 0x357   : > { %v4495_v23 = vunpack.i.l.bf16 %v3888_v31  ;;  %v3989_v20 = vsel %vm3258_vm8, %v3806_v54, %v3814_v18  ;;  %v4008_v54 = vsel %vm3252_vm7, %v3778_v58, %v3786_v30  ;;  %v4026_v58 = vsel %vm3252_vm7, %v1176_v13, %v1204_v43 }
 0x358   : > { %2240 = vmatprep.subr.bf16.mxu1 %v2239_v38  ;;  %v1200_v38 = vsel %vm498_vm4, %v2616_v33, %v2621_v3  ;;  %v1293_v44 = vsel %vm473_vm3, %v4493_v2, %v4492_v36  ;;  %v1181_v36 = vsel %vm473_vm3, %v2612_v49, %v2607_v63  ;;  %v2251_v13 = vpack.c.bf16 %v4008_v54, %v4002_v21 }
 0x359   : > { %v3912_v22 = vpop.permute.xlu1 %2634  ;;  %v3914_v47 = vpop.permute.xlu0 %2639  ;;  %v1292_v45 = vsel %vm473_vm3, %v4495_v23, %v4494_v10  ;;  %v1180_v23 = vsel %vm473_vm3, %v2611_v46, %v2606_v62  ;;  %v1212_v63 = vsel %vm3042_vm6, %v3924_v0, %v1181_v36 }
 0x35a   : > { %v4405_v12 = vunpack.i.h.bf16 %v3914_v47  ;;  %v4496_v28 = vunpack.i.h.bf16 %v3912_v22  ;;  %v4497_v33 = vunpack.i.l.bf16 %v3914_v47  ;;  %v4498_v16 = vunpack.i.l.bf16 %v3912_v22 }
 0x35b   : > { %v4507_v7 = vunpack.i.h.bf16 %v3912_v22  ;;  %v4508_v9 = vunpack.i.h.bf16 %v3914_v47  ;;  %v4516_v15 = vld [vmem:[#allocation8_spill] sm:$0xff] }
 0x35c   : > { %v1313_v3 = vsel %vm498_vm4, %v4496_v28, %v4405_v12  ;;  %v1312_v2 = vsel %vm498_vm4, %v4498_v16, %v4497_v33  ;;  %v1210_v33 = vsel %vm3042_vm6, %v1200_v38, %v1180_v23 }
 0x35d   : > { %v3956_v10 = vpop.permute.xlu1 %2644  ;;  %v3958_v51 = vpop.permute.xlu0 %2649  ;;  %v3962_v28 = vsel %vm3042_vm6, %v1312_v2, %v1292_v45  ;;  %v3966_v12 = vsel %vm3042_vm6, %v1313_v3, %v1293_v44  ;;  %v4042_v43 = vsel %vm3258_vm8, %v1292_v45, %v1312_v2  ;;  %v4054_v45 = vsel %vm3258_vm8, %v1293_v44, %v1313_v3 }
 0x35e   : > { %v1330_v62 = vsel %vm364_vm0, %v3962_v28, %v1210_v33  ;;  %v1332_v49 = vsel %vm364_vm0, %v3966_v12, %v1212_v63  ;;  %v4499_v33 = vpack.c.bf16 %v3619_v52, %v3615_v34  ;;  %v1406_v34 = vsel %vm3258_vm8, %v3826_v50, %v3802_v4 }
 0x35f   : > { %v2241_v41 = vpack.c.bf16 %v1332_v49, %v1330_v62  ;;  %v1408_v52 = vsel %vm3258_vm8, %v3822_v5, %v3798_v25  ;;  %v1430_v57 = vsel %vm364_vm0, %v3983_v53, %v1406_v34  ;;  %v4030_v4 = vsel %vm3252_vm7, %v1177_v42, %v1205_v61 }
 0x360   : > { %v1432_v59 = vsel %vm364_vm0, %v3989_v20, %v1408_v52  ;;  %v4500_v5 = vpack.c.bf16 %v3653_v32, %v3648_v19  ;;  %v4501_v50 = vpack.c.bf16 %v3666_v37, %v3662_v39  ;;  %v2647_v42 = vunpack.i.h.bf16 %v3956_v10 }
 0x361   : > { %v2655_v46 = vpop.permute.xlu1 %2654  ;;  %v2660_v16 = vpop.permute.xlu0 %2659  ;;  %2242 = vmatpush1.bf16.msra.mxu1 %v2241_v41  ;;  %v2646_v61 = vunpack.i.l.bf16 %v3956_v10  ;;  %v2652_v41 = vunpack.i.h.bf16 %v3958_v51  ;;  %v2651_v19 = vunpack.i.l.bf16 %v3958_v51  ;;  %v2255_v39 = vpack.c.bf16 %v4030_v4, %v4026_v58 }
 0x362   : > { %2244 = vmatprep.subr.bf16.mxu1 %v4499_v33  ;;  %v2657_v30 = vunpack.i.h.bf16 %v2655_v46  ;;  %v2656_v18 = vunpack.i.l.bf16 %v2655_v46  ;;  %v2662_v56 = vunpack.i.h.bf16 %v2660_v16  ;;  %v2661_v25 = vunpack.i.l.bf16 %v2660_v16 }
 0x363   : > { %v2253_v46 = vpack.c.bf16 %v1432_v59, %v1430_v57  ;;  %v1410_v37 = vsel %vm3258_vm8, %v1180_v23, %v1200_v38  ;;  %v4502_v51 = vpack.c.bf16 %v3705_v40, %v3700_v26  ;;  %v1412_v16 = vsel %vm3258_vm8, %v1181_v36, %v3924_v0 }
 0x364   : > { %v1259_v2 = vsel %vm498_vm4, %v2662_v56, %v2657_v30  ;;  %v1258_v10 = vsel %vm498_vm4, %v2661_v25, %v2656_v18  ;;  %v1434_v38 = vsel %vm364_vm0, %v4042_v43, %v1410_v37  ;;  %v1231_v34 = vsel %vm473_vm3, %v2647_v42, %v2652_v41 }
 0x365   : > { %v3994_v63 = vpop.permute.xlu1 %2664  ;;  %v3996_v62 = vpop.permute.xlu0 %2669  ;;  %2246 = vmatpush1.bf16.msra.mxu1 %v4500_v5  ;;  %v1230_v26 = vsel %vm473_vm3, %v2646_v61, %v2651_v19  ;;  %v1254_v40 = vsel %vm498_vm4, %v2656_v18, %v2661_v25  ;;  %v1436_v0 = vsel %vm364_vm0, %v4054_v45, %v1412_v16  ;;  %v1255_v5 = vsel %vm498_vm4, %v2657_v30, %v2662_v56 }
 0x366   : > { %2248 = vmatprep.subr.bf16.mxu1 %v4501_v50  ;;  %v2667_v36 = vunpack.i.h.bf16 %v3994_v63  ;;  %v2666_v52 = vunpack.i.l.bf16 %v3994_v63  ;;  %v2672_v57 = vunpack.i.h.bf16 %v3996_v62  ;;  %v2671_v59 = vunpack.i.l.bf16 %v3996_v62 }
 0x367   : > { %v1263_v50 = vsel %vm3011_vm5, %v1258_v10, %v1230_v26  ;;  %v1265_v18 = vsel %vm3011_vm5, %v1259_v2, %v1231_v34  ;;  %v1234_v25 = vsel %vm473_vm3, %v2651_v19, %v2646_v61  ;;  %v1235_v62 = vsel %vm473_vm3, %v2652_v41, %v2647_v42 }
 0x368   : > { %v2257_v30 = vpack.c.bf16 %v1436_v0, %v1434_v38  ;;  %v1262_v56 = vsel %vm3042_vm6, %v1254_v40, %v1234_v25  ;;  %v1232_v61 = vsel %vm473_vm3, %v2666_v52, %v2671_v59  ;;  %v2259_v19 = vpack.c.bf16 %v1265_v18, %v1263_v50 }
 0x369   : > { %v2675_v32 = vpop.permute.xlu1 %2674  ;;  %v2680_v49 = vpop.permute.xlu0 %2679  ;;  %2250 = vmatpush1.bf16.msra.mxu1 %v4502_v51  ;;  %v1237_v37 = vsel %vm473_vm3, %v2672_v57, %v2667_v36  ;;  %v1236_v51 = vsel %vm473_vm3, %v2671_v59, %v2666_v52  ;;  %v4504_v0 = vpack.c.bf16 %v3560_v35, %v3556_v27  ;;  %v1417_v52 = vsel %vm3252_vm7, %v1231_v34, %v1259_v2 }
 0x36a   : > { %v2677_v44 = vunpack.i.h.bf16 %v2675_v32  ;;  %v2676_v3 = vunpack.i.l.bf16 %v2675_v32  ;;  %v2682_v23 = vunpack.i.h.bf16 %v2680_v49  ;;  %v2681_v33 = vunpack.i.l.bf16 %v2680_v49  ;;  %2252 = vmatprep.subr.bf16.mxu1 %v2251_v13 }
 0x36b   : > { %v1233_v32 = vsel %vm473_vm3, %v2667_v36, %v2672_v57  ;;  %v1264_v49 = vsel %vm3042_vm6, %v1255_v5, %v1235_v62  ;;  %v1415_v36 = vsel %vm3252_vm7, %v1230_v26, %v1258_v10  ;;  %v1414_v59 = vsel %vm3258_vm8, %v1234_v25, %v1254_v40 }
 0x36c   : > { %v1261_v63 = vsel %vm498_vm4, %v2682_v23, %v2677_v44  ;;  %v1260_v13 = vsel %vm498_vm4, %v2681_v33, %v2676_v3  ;;  %v1256_v42 = vsel %vm498_vm4, %v2676_v3, %v2681_v33  ;;  %v2261_v16 = vpack.c.bf16 %v1264_v49, %v1262_v56  ;;  %v4517_v56 = vld [vmem:[#allocation7_spill] sm:$0xff] }
 0x36d   : > { %2254 = vmatpush1.bf16.msra.mxu1 %v2253_v46  ;;  %v1257_v46 = vsel %vm498_vm4, %v2677_v44, %v2682_v23  ;;  %v1267_v41 = vsel %vm3011_vm5, %v1260_v13, %v1232_v61  ;;  %v1266_v44 = vsel %vm3042_vm6, %v1256_v42, %v1236_v51  ;;  %v4503_v33 = vpack.c.bf16 %v3562_v55, %v3558_v60 }
 0x36e   : > { %2256 = vmatprep.subr.bf16.mxu1 %v2255_v39  ;;  %v1269_v39 = vsel %vm3011_vm5, %v1261_v63, %v1233_v32  ;;  %v1268_v3 = vsel %vm3042_vm6, %v1257_v46, %v1237_v37  ;;  %v2275_v57 = vpack.c.bf16 %v1417_v52, %v1415_v36  ;;  %v1416_v60 = vsel %vm3258_vm8, %v1235_v62, %v1255_v5  ;;  %v4532_v36 = vld [vmem:[#allocation9_spill] sm:$0xff] }
 0x36f   : > { %v2263_v38 = vpack.c.bf16 %v1269_v39, %v1267_v41  ;;  %v2265_v23 = vpack.c.bf16 %v1268_v3, %v1266_v44  ;;  %v4506_v27 = vpack.c.bf16 %v3587_v8, %v3583_v6  ;;  %v1419_v35 = vsel %vm3252_vm7, %v1232_v61, %v1260_v13  ;;  %v4519_v61 = vld [vmem:[#allocation17_spill] sm:$0xff]  ;;  %v4524_v39 = vld [vmem:[#allocation6_spill] sm:$0xff]  ;;  %v4528_v3 = vld [vmem:[#allocation19_spill] sm:$0xff] }
 0x370   : > { %v1421_v55 = vsel %vm3252_vm7, %v1233_v32, %v1261_v63  ;;  %v1317_v2 = vsel %vm498_vm4, %v4508_v9, %v4507_v7  ;;  %v4509_v10 = vunpack.i.l.bf16 %v3912_v22  ;;  %v4510_v34 = vunpack.i.l.bf16 %v3914_v47 }
 0x371   : > { %2258 = vmatpush1.bf16.msra.mxu1 %v2257_v30  ;;  %v2277_v8 = vpack.c.bf16 %v1416_v60, %v1414_v59  ;;  %v2279_v26 = vpack.c.bf16 %v1421_v55, %v1419_v35  ;;  %v1418_v40 = vsel %vm3258_vm8, %v1236_v51, %v1256_v42  ;;  %v1420_v5 = vsel %vm3258_vm8, %v1237_v37, %v1257_v46  ;;  %v4521_v42 = vld [vmem:[#allocation14_spill] sm:$0xff]  ;;  %v4525_v37 = vld [vmem:[#allocation12_spill] sm:$0xff] }
 0x372   : > { %2260 = vmatprep.subr.bf16.mxu1 %v2259_v19  ;;  %v1316_v6 = vsel %vm498_vm4, %v4510_v34, %v4509_v10  ;;  %v4511_v50 = vunpack.i.h.bf16 %v3888_v31  ;;  %v4512_v18 = vunpack.i.h.bf16 %v3886_v1  ;;  %v4513_v47 = vunpack.i.l.bf16 %v3888_v31  ;;  %v4515_v31 = vld [vmem:[#allocation11_spill] sm:$0xff]  ;;  %v4520_v19 = vld [vmem:[#allocation16_spill] sm:$0xff]  ;;  %v4534_v60 = vld [vmem:[#allocation10_spill] sm:$0xff] }
 0x373   : > { %v4514_v25 = vunpack.i.l.bf16 %v3886_v1  ;;  %v2281_v62 = vpack.c.bf16 %v1420_v5, %v1418_v40  ;;  %v4518_v32 = vpack.c.bf16 %v4516_v15, %v4517_v56  ;;  %v2285_v49 = vpack.c.bf16 %v4520_v19, %v4519_v61  ;;  %v392_v34 = vld [vmem:[%s4357_s3 + $0x40] sm:$0xff] }
 0x374   : > { %v1289_v22 = vsel %vm473_vm3, %v4512_v18, %v4511_v50  ;;  %v2289_v48 = vpack.c.bf16 %v3966_v12, %v3962_v28  ;;  %v1423_v51 = vsel %vm3252_vm7, %v4525_v37, %v4524_v39  ;;  %v2301_v7 = vpack.c.bf16 %v3989_v20, %v3983_v53  ;;  %v390_v20 = vld [vmem:[%s4357_s3 + $0x30] sm:$0xff] }
 0x375   : > { %2262 = vmatpush1.bf16.msra.mxu1 %v2261_v16  ;;  %v1288_v63 = vsel %vm473_vm3, %v4514_v25, %v4513_v47  ;;  %v1325_v13 = vsel %vm3011_vm5, %v1317_v2, %v1289_v22  ;;  %v4526_v16 = vld [vmem:[#allocation18_spill] sm:$0xff]  ;;  %v1439_v12 = vsel %vm367_vm2, %v4002_v21, %v1423_v51  ;;  %v384_v21 = vld [vmem:[%s4357_s3] sm:$0xff]  ;;  %v394_v53 = vld [vmem:[%s4357_s3 + $0x50] sm:$0xff]  ;;  %v4537_v10 = vmov 0.0  }
 0x376   : > { %2264 = vmatprep.subr.bf16.mxu1 %v2263_v38  ;;  %v1323_v29 = vsel %vm3011_vm5, %v1316_v6, %v1288_v63  ;;  %v1341_v1 = vsel %vm367_vm2, %v4515_v31, %v1325_v13  ;;  %v4527_v38 = vld [vmem:[#allocation5_spill] sm:$0xff]  ;;  %vm2714_vm0 = vmmov 0   ;;  %vm1883_vm3 = vcmask 1041408  }
 0x377   : > { %v1339_v30 = vsel %vm367_vm2, %v3892_v14, %v1323_v29  ;;  %v4522_v14 = vld [vmem:[#allocation13_spill] sm:$0xff]  ;;  %v1425_v44 = vsel %vm3252_vm7, %v4527_v38, %v4526_v16  ;;  %2152 = vmatprep.mubr.msk.f32.mxu0 %vm2714_vm0, %v4537_v10 }
 0x378   : > { %v2287_v46 = vpack.c.bf16 %v1341_v1, %v1339_v30  ;;  %v4523_v41 = vpack.c.bf16 %v4521_v42, %v4522_v14  ;;  %v1441_v28 = vsel %vm367_vm2, %v4008_v54, %v1425_v44  ;;  %v2713_v42 = vmov 0.0|0.0  }
 0x379   : > { %2266 = vmatpush1.bf16.msra.mxu1 %v2265_v23  ;;  %v4529_v23 = vld [vmem:[#allocation20_spill] sm:$0xff]  ;;  %v2299_v59 = vpack.c.bf16 %v1441_v28, %v1439_v12  ;;  %2307 = vmatprep.subr.bf16.mxu0 %v2713_v42  ;;  %v1859_v12 = vld [vmem:[%s4361_s7] sm:$0xff] }
 0x37a   : > { %2268 = vmatprep.subr.bf16.mxu1 %v4503_v33  ;;  %v4530_v33 = vpack.c.bf16 %v4528_v3, %v4529_v23  ;;  %v1550_v18 = vpop.permute.xlu0 %1549  ;;  %v1785_v28 = vld [vmem:[%s4360_s6] sm:$0x3] }
 0x37d   : > { %2270 = vmatpush1.bf16.msra.mxu1 %v4504_v0  ;;  %v4531_v0 = vld [vmem:[#allocation15_spill] sm:$0xff] }
 0x37e   : > { %2272 = vmatprep.subr.bf16.mxu1 %v4505_v11  ;;  %v4533_v52 = vpack.c.bf16 %v4531_v0, %v4532_v36  ;;  %v1427_v11 = vsel %vm3252_vm7, %v1288_v63, %v1316_v6  ;;  %v395_v6 = vld [vmem:[%s4357_s3 + $0x58] sm:$0xff]  ;;  %v1560_v56 = vpop.permute.xlu0 %1559 }
 0x37f   : > { %v1443_v54 = vsel %vm367_vm2, %v4026_v58, %v1427_v11  ;;  %v387_v58 = vld [vmem:[%s4357_s3 + $0x18] sm:$0xff] }
 0x381   : > { %2274 = vmatpush1.bf16.msra.mxu1 %v4506_v27  ;;  %v4535_v27 = vld [vmem:[#allocation21_spill] sm:$0xff] }
 0x382   : > { %2276 = vmatprep.subr.bf16.mxu1 %v2275_v57  ;;  %v1429_v57 = vsel %vm3252_vm7, %v1289_v22, %v1317_v2  ;;  %v4536_v35 = vpack.c.bf16 %v4534_v60, %v4535_v27  ;;  %v393_v2 = vld [vmem:[%s4357_s3 + $0x48] sm:$0xff]  ;;  %v1861_v60 = vld [vmem:[%s4361_s7 + $0x10] sm:$0xff]  ;;  %v1862_v27 = vld [vmem:[%s4361_s7 + $0x18] sm:$0xff] }
 0x383   : > { %v1445_v55 = vsel %vm367_vm2, %v4030_v4, %v1429_v57  ;;  %v2305_v4 = vpack.c.bf16 %v4054_v45, %v4042_v43  ;;  %v386_v43 = vld [vmem:[%s4357_s3 + $0x10] sm:$0xff]  ;;  %v389_v45 = vld [vmem:[%s4357_s3 + $0x28] sm:$0xff] }
 0x384   : > { %v2303_v9 = vpack.c.bf16 %v1445_v55, %v1443_v54 }
 0x385   : > { %2278 = vmatpush1.bf16.msra.mxu1 %v2277_v8  ;;  %v1545_v8 = vpop.permute.xlu1 %1544 }
 0x386   : > { %2280 = vmatprep.subr.bf16.mxu1 %v2279_v26 }
 0x389   : > { %2282 = vmatpush1.bf16.msra.mxu1 %v2281_v62  ;;  %v1555_v13 = vpop.permute.xlu1 %1554 }
 0x38a   : > { %2284 = vmatprep.subr.bf16.mxu1 %v4518_v32 }
 0x38d   : > { %2286 = vmatpush1.bf16.msra.mxu1 %v2285_v49 }
 0x38e   : > { %2288 = vmatprep.subr.bf16.mxu1 %v2287_v46 }
 0x391   : > { %2290 = vmatpush1.bf16.msra.mxu1 %v2289_v48 }
 0x392   : > { %2292 = vmatprep.subr.bf16.mxu1 %v4523_v41 }
 0x395   : > { %2294 = vmatpush1.bf16.msra.mxu1 %v4530_v33  ;;  %v1784_v33 = vld [vmem:[%s4359_s5] sm:$0x3] }
 0x396   : > { %2296 = vmatprep.subr.bf16.mxu1 %v4533_v52 }
 0x399   : > { %2298 = vmatpush1.bf16.msra.mxu1 %v4536_v35  ;;  %v1867_v35 = vld [vmem:[%s4362_s8 + $0x8] sm:$0xff] }
 0x39a   : > { %2300 = vmatprep.subr.bf16.mxu1 %v2299_v59  ;;  %v1860_v59 = vld [vmem:[%s4361_s7 + $0x8] sm:$0xff] }
 0x39c   : > { %1639 = vmatmul.mubr.f32.vlgmr.msra.gmra.mrb[0].mxu1 %v384_v21  ;;  %v1866_v21 = vld [vmem:[%s4362_s8] sm:$0xff] }
 0x39d   : > { %2302 = vmatpush1.bf16.msra.mxu1 %v2301_v7  ;;  %1644 = vmatprep.mubr.f32.mxu1 %v388_v17 }
 0x39e   : > { %2304 = vmatprep.subr.bf16.mxu1 %v2303_v9  ;;  %v1869_v9 = vld [vmem:[%s4362_s8 + $0x18] sm:$0xff] }
 0x3a0   : > { %1645 = vmatmul.mubr.f32.gmra.mrb[2].mxu1 %v387_v58 }
 0x3a1   : > { %2306 = vmatpush1.bf16.msra.mxu1 %v2305_v4  ;;  %1650 = vmatprep.mubr.f32.mxu1 %v391_v24  ;;  %v1868_v24 = vld [vmem:[%s4362_s8 + $0x10] sm:$0xff] }
 0x3a4   : > { %1651 = vmatmul.mubr.f32.gmra.mrb[4].mxu1 %v390_v20 }
 0x3a5   : > { %1656 = vmatprep.mubr.f32.mxu1 %v394_v53 }
 0x3a8   : > { %1657 = vmatmul.mubr.f32.gmra.mrb[6].mxu1 %v393_v2 }
 0x3a9   : > { %1727 = vmatprep.mubr.f32.mxu1 %v4537_v10 }
 0x3ac   : > { %2116 = vmatmul.mubr.msk.f32.vlgmr.msra.gmra.mrb[0].mxu1 %vm879_vm9, %v386_v43 }
 0x3ad   : > { %1733 = vmatprep.mubr.f32.mxu1 %v4537_v10 }
 0x3b0   : > { %2117 = vmatmul.mubr.msk.f32.gmra.mrb[2].mxu1 %vm879_vm9, %v389_v45 }
 0x3b1   : > { %1739 = vmatprep.mubr.f32.mxu1 %v4537_v10 }
 0x3b4   : > { %2118 = vmatmul.mubr.msk.f32.gmra.mrb[4].mxu1 %vm879_vm9, %v392_v34 }
 0x3b5   : > { %1745 = vmatprep.mubr.f32.mxu1 %v4537_v10 }
 0x3b8   : > { %2119 = vmatmul.mubr.msk.f32.gmra.mrb[6].mxu1 %vm879_vm9, %v395_v6 }
 0x3b9   : > { %2157 = vmatprep.mubr.msk.f32.mxu1 %vm1870_vm1, %v1859_v12 }
 0x47f   : > { %v1729_v26 = vpop.f32.mrb[0].mxu1 }
 0x480   : > { %v4270_v40 = vadd.f32 %v1729_v26, %v1545_v8  ;;  %v1731_v5 = vpop.f32.mrb[1].mxu1 }
 0x481   : > { %v4272_v50 = vadd.f32 %v1731_v5, %v1545_v8 }
 0x483   : > { %v1735_v22 = vpop.f32.mrb[2].mxu1  ;;  %v1768_v47 = vadd.f32 %v4272_v50, %v4270_v40 }
 0x484   : > { %v4276_v25 = vadd.f32 %v1735_v22, %v1550_v18  ;;  %v1737_v63 = vpop.f32.mrb[3].mxu1 }
 0x485   : > { %v4278_v29 = vadd.f32 %v1737_v63, %v1550_v18  ;;  %1769 = vadd.xlane.f32.xlu1 %v1768_v47 }
 0x487   : > { %v1741_v62 = vpop.f32.mrb[4].mxu1  ;;  %v1771_v30 = vadd.f32 %v4278_v29, %v4276_v25 }
 0x488   : > { %v4282_v31 = vadd.f32 %v1741_v62, %v1555_v13  ;;  %v1743_v1 = vpop.f32.mrb[5].mxu1 }
 0x489   : > { %v4284_v15 = vadd.f32 %v1743_v1, %v1555_v13  ;;  %1772 = vadd.xlane.f32.xlu0 %v1771_v30  ;;  %v2026_v1 = vld [vmem:[%s2781_s14 + $0x10] sm:$0xff] }
 0x48b   : > { %v1747_v32 = vpop.f32.mrb[6].mxu1  ;;  %v1774_v61 = vadd.f32 %v4284_v15, %v4282_v31 }
 0x48c   : > { %v4288_v19 = vadd.f32 %v1747_v32, %v1560_v56  ;;  %v1749_v49 = vpop.f32.mrb[7].mxu1 }
 0x48d   : > { %v4290_v46 = vadd.f32 %v1749_v49, %v1560_v56  ;;  %1775 = vadd.xlane.f32.xlu0 %v1774_v61  ;;  %v2027_v56 = vld [vmem:[%s2781_s14 + $0x18] sm:$0xff] }
 0x48f   : > { %v1777_v48 = vadd.f32 %v4290_v46, %v4288_v19 }
 0x491   : > { %1778 = vadd.xlane.f32.xlu1 %v1777_v48  ;;  %v2024_v48 = vld [vmem:[%s2781_s14] sm:$0xff] }
 0x512   : > { %v1770_v14 = vpop.xlane.xlu1 %1769 }
 0x513   : > { %v1780_v39 = vmul.f32 0.00390625, %v1770_v14 }
 0x516   : > { %v1773_v41 = vpop.xlane.xlu0 %1772 }
 0x517   : > { %v1781_v37 = vmul.f32 0.00390625, %v1773_v41 }
 0x519   : > { %v2308_v51 = vpack.c.bf16 %v1781_v37, %v1780_v39 }
 0x51a   : > { %v1776_v16 = vpop.xlane.xlu0 %1775 }
 0x51b   : > { %2309 = vmatpush3.bf16.msra.mxu0 %v2308_v51  ;;  %v1782_v44 = vmul.f32 0.00390625, %v1776_v16 }
 0x51c   : > { %2310 = vmatprep.subr.bf16.mxu0 %v2713_v42  ;;  %v2025_v42 = vld [vmem:[%s2781_s14 + $0x8] sm:$0xff] }
 0x51e   : > { %v1779_v38 = vpop.xlane.xlu1 %1778 }
 0x51f   : > { %v1783_v3 = vmul.f32 0.00390625, %v1779_v38  ;;  %v2028_v38 = vld [vmem:[%s2781_s14 + $0x20] sm:$0xff] }
 0x521   : > { %v2311_v23 = vpack.c.bf16 %v1783_v3, %v1782_v44  ;;  %v2030_v3 = vld [vmem:[%s2781_s14 + $0x30] sm:$0xff] }
 0x523   : > { %2312 = vmatpush3.bf16.msra.mxu0 %v2311_v23  ;;  %v2031_v23 = vld [vmem:[%s2781_s14 + $0x38] sm:$0xff] }
 0x526   : > { %2153 = vmatmul.mubr.msk.f32.vlgmr.msra.gmra.mrb[8].mxu0 %vm879_vm9, %v1784_v33 }
 0x5f9   : > { %v1855_v0 = vpop.f32.mrb[8].mxu0 }
 0x5fa   : > { %v1856_v36 = vadd.f32 %v1855_v0, %v1785_v28  ;;  %v2154_v52 = vpop.f32.mrb[9].mxu0 }
 0x5fc   : > { %vm1863_vm2 = vcmp.ge.f32.partialorder %v1856_v36, 0.0  ;;  %v1864_v11 = vmul.f32 0.01, %v1856_v36 }
 0x5fe   : > { %v1865_v57 = vsel %vm1863_vm2, %v1856_v36, %v1864_v11 }
 0x5ff   : > { %2155 = vmatprep.subr.msk.mxu1 %vm1883_vm3, %v1865_v57 }
 0x600   : > { %2156 = vmatpush3.msk.msra.mxu1 %vm1883_vm3, %v1865_v57 }
 0x601   : > { %2158 = vmatmul.mubr.msk.f32.vlgmr.msra.gmra.mrb[8].mxu1 %vm1870_vm1, %v1860_v59 }
 0x602   : > { %2160 = vmatprep.mubr.msk.f32.mxu1 %vm1870_vm1, %v1861_v60 }
 0x605   : > { %2161 = vmatmul.mubr.msk.f32.gmra.mrb[10].mxu1 %vm1870_vm1, %v1862_v27 }
 0x6d4   : > { %v2159_v54 = vpop.f32.mrb[8].mxu1 }
 0x6d5   : > { %v1959_v55 = vadd.f32 %v2159_v54, %v1867_v35  ;;  %v1953_v17 = vpop.f32.mrb[9].mxu1 }
 0x6d6   : > { %v1954_v7 = vadd.f32 %v1953_v17, %v1866_v21 }
 0x6d7   : > { %v2127_v58 = vmul.f32 -1.442695, %v1959_v55 }
 0x6d8   : > { %v2126_v4 = vmul.f32 -1.442695, %v1954_v7  ;;  %v2162_v20 = vpop.f32.mrb[10].mxu1 }
 0x6d9   : > { %2683 = vpow2.f32 %v2127_v58  ;;  %v1969_v53 = vadd.f32 %v2162_v20, %v1869_v9  ;;  %v1963_v2 = vpop.f32.mrb[11].mxu1 }
 0x6da   : > { %2685 = vpow2.f32 %v2126_v4  ;;  %v1964_v10 = vadd.f32 %v1963_v2, %v1868_v24 }
 0x6db   : > { %v2129_v43 = vmul.f32 -1.442695, %v1969_v53 }
 0x6dc   : > { %v2128_v45 = vmul.f32 -1.442695, %v1964_v10 }
 0x6dd   : > { %2687 = vpow2.f32 %v2129_v43 }
 0x6de   : > { %2689 = vpow2.f32 %v2128_v45 }
 0x6e3   : > { %v2684_v34 = vpop.eup %2683 }
 0x6e4   : > { %v2686_v6 = vpop.eup %2685  ;;  %v1985_v8 = vadd.f32 1.0, %v2684_v34 }
 0x6e5   : > { %v1984_v26 = vadd.f32 1.0, %v2686_v6 }
 0x6e6   : > { %2691 = vrcp.f32 %v1985_v8 }
 0x6e7   : > { %v2688_v5 = vpop.eup %2687  ;;  %2693 = vrcp.f32 %v1984_v26 }
 0x6e8   : > { %v2690_v18 = vpop.eup %2689  ;;  %v1987_v22 = vadd.f32 1.0, %v2688_v5 }
 0x6e9   : > { %v1986_v47 = vadd.f32 1.0, %v2690_v18 }
 0x6ea   : > { %2695 = vrcp.f32 %v1987_v22 }
 0x6eb   : > { %2697 = vrcp.f32 %v1986_v47 }
 0x6f0   : > { %v2692_v63 = vpop.eup %2691 }
 0x6f1   : > { %v2694_v13 = vpop.eup %2693  ;;  %2003 = vperm.xlu1 %2522, %v2692_v63  }
 0x6f2   : > { %1998 = vperm.xlu0 %2521, %v2694_v13  }
 0x6f4   : > { %v2696_v62 = vpop.eup %2695 }
 0x6f5   : > { %v2698_v30 = vpop.eup %2697 }
 0x6f6   : > { %2008 = vperm.xlu1 %2522, %v2698_v30   ;;  %2013 = vperm.xlu0 %2521, %v2696_v62  }
 0x770   : > { %v2004_v32 = vpop.permute.xlu1 %2003 }
 0x771   : > { %v2018_v61 = vmul.f32 %v4276_v25, %v2004_v32  ;;  %v2019_v49 = vmul.f32 %v4278_v29, %v2004_v32  ;;  %v1999_v14 = vpop.permute.xlu0 %1998  ;;  %v2029_v29 = vld [vmem:[%s2781_s14 + $0x28] sm:$0xff] }
 0x772   : > { %v2016_v41 = vmul.f32 %v4270_v40, %v1999_v14  ;;  %v2017_v39 = vmul.f32 %v4272_v50, %v1999_v14 }
 0x773   : > { %v2034_v37 = vadd.f32 %v2026_v1, %v2018_v61  ;;  %v2035_v51 = vadd.f32 %v2027_v56, %v2019_v49 }
 0x774   : > { %v2032_v16 = vadd.f32 %v2024_v48, %v2016_v41  ;;  %v2033_v25 = vadd.f32 %v2025_v42, %v2017_v39 }
 0x775   : > { %2042 = vst [vmem:[%s332_s26 + $0x10] sm:$0xff] %v2034_v37  ;;  %2043 = vst [vmem:[%s332_s26 + $0x18] sm:$0xff] %v2035_v51  ;;  %v2009_v44 = vpop.permute.xlu1 %2008  ;;  %v2014_v33 = vpop.permute.xlu0 %2013 }
 0x776   : > { %2040 = vst [vmem:[%s332_s26] sm:$0xff] %v2032_v16  ;;  %2041 = vst [vmem:[%s332_s26 + $0x8] sm:$0xff] %v2033_v25  ;;  %v2020_v12 = vmul.f32 %v4282_v31, %v2009_v44  ;;  %v2021_v40 = vmul.f32 %v4284_v15, %v2009_v44  ;;  %v2022_v50 = vmul.f32 %v4288_v19, %v2014_v33 }
 0x777   : > { %v2023_v28 = vmul.f32 %v4290_v46, %v2014_v33 }
 0x778   : > { %v2036_v0 = vadd.f32 %v2028_v38, %v2020_v12  ;;  %v2037_v36 = vadd.f32 %v2029_v29, %v2021_v40  ;;  %v2038_v52 = vadd.f32 %v2030_v3, %v2022_v50 }
 0x779   : > { %v2039_v11 = vadd.f32 %v2031_v23, %v2023_v28 }
 0x77a   : > { %2044 = vst [vmem:[%s332_s26 + $0x20] sm:$0xff] %v2036_v0  ;;  %2045 = vst [vmem:[%s332_s26 + $0x28] sm:$0xff] %v2037_v36 }
 0x77b   : > { %2046 = vst [vmem:[%s332_s26 + $0x30] sm:$0xff] %v2038_v52  ;;  %2047 = vst [vmem:[%s332_s26 + $0x38] sm:$0xff] %v2039_v11 }
 0x77c PF: > { %s19_s30 = sadd.s32 1, %s2705_s30  }
 0x77d   : > { %p16_p4 = scmp.ge.s32.totalorder %s19_s30, 4  }
 0x77f   :  { %18 = sbr.rel (!%p16_p4) target bundleno = 1 (0x1), region = 86 }

</bundles_post_ra>
